<compile_context>
chip_gen: v7x
topology: tpu7x:2x2x1
jax: 0.10.0
libtpu: 0.0.40
codegen_flags: <defaults>
</compile_context>

<pallas_src>
import functools

import jax
import jax.numpy as jnp
import numpy as np
from jax import lax
from jax.experimental import pallas as pl
from jax.experimental.pallas import tpu as pltpu


def _pair(v):
    return (v, v) if isinstance(v, int) else tuple(v)


def _round_up(x, m):
    return ((x + m - 1) // m) * m


def _cdiv(a, b):
    return -(-a // b)


# -----------------------------------------------------------------------------
# Fused conv kernel.
#
#   x_ref: (sh*sw, Hph, Wph, Cin_pad)  bf16 -- one zero-padded input image,
#          split into stride phases so that every slice below is contiguous:
#          phases[qh*sw + qw, a, b, :] == x_padded[a*sh + qh, b*sw + qw, :].
#          Resident in VMEM across all row blocks of the image.
#   w_ref: (KH*KW, Cin_pad, Cout_pad)  bf16 -- resident for the whole grid.
#   b_ref: (1, Cout_pad)               f32
#   o_ref: (hb*wo_r, Cout_pad)         -- lane-dense output block.
#
# out[y, x, :] = sum_{i,j} x_padded[y*sh + i, x*sw + j, :] @ W[i, j] + b
# computed as KH*KW shifted matmuls accumulated in f32 on the MXU.
# -----------------------------------------------------------------------------
def _conv_fused_kernel(x_ref, w_ref, b_ref, o_ref, *,
                       kh, kw, sh, sw, hb, wo_r, apply_act):
    row0 = pl.program_id(1) * hb
    cout_pad = o_ref.shape[-1]
    acc = jnp.zeros((hb * wo_r, cout_pad), jnp.float32)
    for i in range(kh):                       # static unroll (KH*KW is small)
        for j in range(kw):
            phase = (i % sh) * sw + (j % sw)
            xs = x_ref[phase,
                       pl.ds(row0 + i // sh, hb),
                       pl.ds(j // sw, wo_r), :]          # (hb, wo_r, cin_pad)
            lhs = xs.reshape(hb * wo_r, xs.shape[-1])    # wo_r % 16 == 0
            acc = acc + lax.dot_general(
                lhs, w_ref[i * kw + j],
                (((1,), (0,)), ((), ())),
                preferred_element_type=jnp.float32)
    out = acc + b_ref[...]                    # f32 epilogue
    if apply_act:                             # static; ReLU fused for hidden layers
        out = jnp.maximum(out, 0.0)
    o_ref[...] = out.astype(o_ref.dtype)


def conv2d_pallas(x, wmat, bmat, *, kh, kw, stride, padding, cout,
                  apply_act, out_dtype):
    """One Conv2d layer (PyTorch semantics), NHWC activations in / out.

    x:    (N, H, W, Cin)                any float dtype
    wmat: (KH*KW, Cin_pad, Cout_pad)    bf16, prepacked
    bmat: (1, Cout_pad)                 f32,  prepacked
    """
    n, h, w, cin = x.shape
    sh, sw = _pair(stride)
    ph, pw = _pair(padding)
    cin_pad = wmat.shape[1]
    cout_pad = wmat.shape[2]

    hp, wp = h + 2 * ph, w + 2 * pw
    ho = (hp - kh) // sh + 1
    wo = (wp - kw) // sw + 1
    assert ho > 0 and wo > 0, "conv output is empty for this configuration"

    # ---- tile / grid choices ------------------------------------------------
    # wo_r: output columns computed per row, rounded to a multiple of 16 so the
    # in-kernel (hb, wo_r, cin) -> (hb*wo_r, cin) reshape stays bf16-tile
    # aligned and the output block is lane/sublane dense.  Extra columns read
    # zero padding and are sliced off below (no uninitialized data anywhere).
    wo_r = _round_up(wo, 16)
    # Row blocks: target >= 4 grid blocks total (keeps both v7x TensorCores
    # busy and the pipeline > 1 deep); harmless extra pipelining on v5e/v6e.
    n_hblk = max(1, min(ho, _cdiv(4, n)))
    hb = _cdiv(ho, n_hblk)
    n_hblk = _cdiv(ho, hb)
    ho_r = n_hblk * hb

    # ---- stride-phase decomposition (pure XLA; fuses under jit) -------------
    # Padded-input pixel (a*sh + qh, b*sw + qw) -> phases[qh*sw + qw, a, b].
    hph = max(ho_r + (kh - 1) // sh, _cdiv(hp, sh))
    wph = max(wo_r + (kw - 1) // sw, _cdiv(wp, sw))
    xp = jnp.pad(
        x.astype(jnp.bfloat16),
        ((0, 0),
         (ph, sh * hph - hp + ph),
         (pw, sw * wph - wp + pw),
         (0, cin_pad - cin)),
    )
    xs = (xp.reshape(n, hph, sh, wph, sw, cin_pad)
            .transpose(0, 2, 4, 1, 3, 5)
            .reshape(n, sh * sw, hph, wph, cin_pad))

    # ---- right-sized scoped-VMEM budget (double-buffered blocks + slack) ----
    x_blk = sh * sw * hph * _round_up(wph, 16) * _round_up(cin_pad, 128) * 2
    w_blk = kh * kw * _round_up(cin_pad, 16) * cout_pad * 2
    o_blk = hb * wo_r * cout_pad * jnp.dtype(out_dtype).itemsize
    work = 4 * hb * wo_r * cout_pad * 4
    vmem_limit = int(min(max(2 * (2 * (x_blk + w_blk + o_blk) + work), 8 << 20),
                         32 << 20))
    # TODO(synk): images whose phase-split block exceeds VMEM would need a
    # row-slab input pipeline (pltpu.emit_pipeline); policy nets never do.
    assert x_blk < (24 << 20), "input image too large to keep resident in VMEM"

    out = pl.pallas_call(
        functools.partial(_conv_fused_kernel, kh=kh, kw=kw, sh=sh, sw=sw,
                          hb=hb, wo_r=wo_r, apply_act=apply_act),
        out_shape=jax.ShapeDtypeStruct((n, ho_r * wo_r, cout_pad), out_dtype),
        grid=(n, n_hblk),
        in_specs=[
            # Whole phase-split image; index_map ignores the row-block axis so
            # it is DMA'd once per image and stays resident across row blocks.
            pl.BlockSpec((None, sh * sw, hph, wph, cin_pad),
                         lambda b, r: (b, 0, 0, 0, 0)),
            # Tiny weight / bias: resident for the entire grid.
            pl.BlockSpec((kh * kw, cin_pad, cout_pad), lambda b, r: (0, 0, 0)),
            pl.BlockSpec((1, cout_pad), lambda b, r: (0, 0)),
        ],
        out_specs=pl.BlockSpec((None, hb * wo_r, cout_pad),
                               lambda b, r: (b, r, 0)),
        compiler_params=pltpu.CompilerParams(
            dimension_semantics=("parallel", "parallel"),
            vmem_limit_bytes=vmem_limit,
        ),
    )(xs, wmat, bmat)

    out = out.reshape(n, ho_r, wo_r, cout_pad)[:, :ho, :wo, :cout]
    return out


# -----------------------------------------------------------------------------
# Conv2dPolicy equivalent: conv blocks with ReLU, final conv without.
# -----------------------------------------------------------------------------
class Conv2dPolicyPallas:
    """Pallas-TPU port of Conv2dPolicy.  Public API is NCHW like PyTorch;
    activations are NHWC internally (converted only at the policy boundary)."""

    # TODO(synk): activation_fn is fixed to ReLU (fused into the kernel
    # epilogue); arbitrary nn.Module activations would need another epilogue.

    def __init__(self, channel_sizes, kernel_sizes, strides, paddings, key):
        assert (len(channel_sizes) - 1 == len(kernel_sizes)
                == len(strides) == len(paddings))
        self.channel_sizes = tuple(channel_sizes)
        self.kernel_sizes = tuple(_pair(k) for k in kernel_sizes)
        self.strides = tuple(_pair(s) for s in strides)
        self.paddings = tuple(_pair(p) for p in paddings)

        self.params = []     # PyTorch-layout (w: (Cout,Cin,KH,KW), b: (Cout,))
        prepped = []         # kernel-layout weights, built once (not per call)
        for i in range(len(kernel_sizes)):
            cin, cout = channel_sizes[i], channel_sizes[i + 1]
            kh, kw = self.kernel_sizes[i]
            key, wkey, bkey = jax.random.split(key, 3)
            # PyTorch-like kaiming-uniform bound for Conv2d init.
            fan_in = cin * kh * kw
            bound = 1.0 / np.sqrt(fan_in)
            w = jax.random.uniform(wkey, (cout, cin, kh, kw), jnp.float32,
                                   -bound, bound)
            b = jax.random.uniform(bkey, (cout,), jnp.float32, -bound, bound)
            self.params.append((w, b))

            cin_pad = _round_up(cin, 16)
            cout_pad = _round_up(cout, 128)
            wmat = w.transpose(2, 3, 1, 0).reshape(kh * kw, cin, cout)
            wmat = jnp.pad(wmat, ((0, 0), (0, cin_pad - cin),
                                  (0, cout_pad - cout))).astype(jnp.bfloat16)
            bmat = jnp.pad(b, (0, cout_pad - cout)).reshape(1, cout_pad)
            bmat = bmat.astype(jnp.float32)
            prepped.append((wmat, bmat))
        self.prepped = tuple(prepped)
        self._forward = jax.jit(self._forward_impl)

    def _forward_impl(self, x, prepped):
        n_layers = len(prepped)
        if n_layers == 0:
            return x                               # nn.Identity() case
        h = x.transpose(0, 2, 3, 1)                # NCHW -> NHWC once
        for idx in range(n_layers):
            wmat, bmat = prepped[idx]
            kh, kw = self.kernel_sizes[idx]
            last = idx == n_layers - 1
            h = conv2d_pallas(
                h, wmat, bmat,
                kh=kh, kw=kw,
                stride=self.strides[idx], padding=self.paddings[idx],
                cout=self.channel_sizes[idx + 1],
                apply_act=not last,
                out_dtype=x.dtype if last else jnp.bfloat16)
        return h.transpose(0, 3, 1, 2)             # NHWC -> NCHW once

    def __call__(self, x):
        return self._forward(x, self.prepped)


# -----------------------------------------------------------------------------
# Reference (plain JAX), mirroring the kernel's bf16-input / f32-accumulate
# mixed precision, for a silent correctness check.
# -----------------------------------------------------------------------------
def _ref_forward(x, params, strides, paddings):
    act = x
    n_layers = len(params)
    for idx, (w, b) in enumerate(params):
        sh, sw = _pair(strides[idx])
        ph, pw = _pair(paddings[idx])
        xr = act.astype(jnp.bfloat16).astype(jnp.float32)
        wr = w.astype(jnp.bfloat16).astype(jnp.float32)
        out = lax.conv_general_dilated(
            xr, wr, (sh, sw), ((ph, ph), (pw, pw)),
            dimension_numbers=("NCHW", "OIHW", "NCHW"),
        ) + b.reshape(1, -1, 1, 1)
        if idx < n_layers - 1:
            out = jnp.maximum(out, 0.0)
            out = out.astype(jnp.bfloat16).astype(jnp.float32)
        act = out
    return act


if __name__ == "__main__":
    key = jax.random.PRNGKey(0)
    key, xkey = jax.random.split(key)

    # Small config consistent with the module:
    channel_sizes = (4, 8, 16)
    kernel_sizes = (3, 3)
    strides = (1, 2)
    paddings = (1, 1)

    policy = Conv2dPolicyPallas(
        channel_sizes, kernel_sizes, strides, paddings, key
    )

    x = jax.random.normal(xkey, (2, 4, 16, 16), jnp.float32)

    out = jax.block_until_ready(policy(x))

    ref = _ref_forward(x, policy.params, strides, paddings)
    assert out.shape == ref.shape == (2, 16, 8, 8), out.shape
    np.testing.assert_allclose(
        np.asarray(out, dtype=np.float32), np.asarray(ref),
        atol=2e-3, rtol=2e-3,
    )

    print("KERNEL_OK")
</pallas_src>

<mosaic_0001>
module attributes {stable_mosaic.version = 11 : i64} {
  func.func @_conv_fused_kernel(%arg0: i32, %arg1: i32, %arg2: memref<1x1x18x18x16xbf16, #tpu.memory_space<vmem>>, %arg3: memref<9x16x128xbf16, #tpu.memory_space<vmem>>, %arg4: memref<1x128xf32, #tpu.memory_space<vmem>>, %arg5: memref<1x128x128xbf16, #tpu.memory_space<vmem>>) attributes {dimension_semantics = [#tpu.dimension_semantics<parallel>, #tpu.dimension_semantics<parallel>], iteration_bounds = array<i64: 2, 2>, scalar_prefetch = 0 : i64, scratch_operands = 0 : i64, tpu.core_type = #tpu.core_type<tc>, window_params = [{transform_indices = @transform_0, window_bounds = array<i64: 1, 1, 18, 18, 16>}, {pipeline_mode = #tpu.pipeline_mode<synchronous>, transform_indices = @transform_1, window_bounds = array<i64: 9, 16, 128>}, {pipeline_mode = #tpu.pipeline_mode<synchronous>, transform_indices = @transform_2, window_bounds = array<i64: 1, 128>}, {transform_indices = @transform_3, window_bounds = array<i64: 1, 128, 128>}]} {
    %c8_i32 = arith.constant 8 : i32
    %0 = arith.muli %arg1, %c8_i32 : i32
    %cst = arith.constant 0.000000e+00 : f32
    %1 = vector.broadcast %cst : f32 to vector<128x128xf32>
    %c0_i32 = arith.constant 0 : i32
    %2 = arith.addi %0, %c0_i32 : i32
    %c0 = arith.constant 0 : index
    %c0_0 = arith.constant 0 : index
    %3 = arith.index_cast %2 : i32 to index
    %c0_1 = arith.constant 0 : index
    %c0_2 = arith.constant 0 : index
    %4 = vector.load %arg2[%c0, %c0_0, %3, %c0_1, %c0_2] : memref<1x1x18x18x16xbf16, #tpu.memory_space<vmem>>, vector<1x1x8x16x16xbf16>
    %5 = vector.shape_cast %4 : vector<1x1x8x16x16xbf16> to vector<8x16x16xbf16>
    %6 = vector.shape_cast %5 : vector<8x16x16xbf16> to vector<128x16xbf16>
    %c0_3 = arith.constant 0 : index
    %c0_4 = arith.constant 0 : index
    %c0_5 = arith.constant 0 : index
    %7 = vector.load %arg3[%c0_3, %c0_4, %c0_5] : memref<9x16x128xbf16, #tpu.memory_space<vmem>>, vector<1x16x128xbf16>
    %8 = vector.shape_cast %7 : vector<1x16x128xbf16> to vector<16x128xbf16>
    %cst_6 = arith.constant dense<0.000000e+00> : vector<128x128xf32>
    %9 = tpu.matmul %6, %8, %cst_6 {dimension_numbers = #tpu.dot_dimension_numbers<[1], [0], [0], [1], [0, 0, 1, 1], [], []>} : vector<128x16xbf16>, vector<16x128xbf16>, vector<128x128xf32> -> vector<128x128xf32>
    %10 = arith.addf %1, %9 : vector<128x128xf32>
    %c0_i32_7 = arith.constant 0 : i32
    %11 = arith.addi %0, %c0_i32_7 : i32
    %c0_8 = arith.constant 0 : index
    %c0_9 = arith.constant 0 : index
    %12 = arith.index_cast %11 : i32 to index
    %c1 = arith.constant 1 : index
    %c0_10 = arith.constant 0 : index
    %13 = vector.load %arg2[%c0_8, %c0_9, %12, %c1, %c0_10] : memref<1x1x18x18x16xbf16, #tpu.memory_space<vmem>>, vector<1x1x8x16x16xbf16>
    %14 = vector.shape_cast %13 : vector<1x1x8x16x16xbf16> to vector<8x16x16xbf16>
    %15 = vector.shape_cast %14 : vector<8x16x16xbf16> to vector<128x16xbf16>
    %c1_11 = arith.constant 1 : index
    %c0_12 = arith.constant 0 : index
    %c0_13 = arith.constant 0 : index
    %16 = vector.load %arg3[%c1_11, %c0_12, %c0_13] : memref<9x16x128xbf16, #tpu.memory_space<vmem>>, vector<1x16x128xbf16>
    %17 = vector.shape_cast %16 : vector<1x16x128xbf16> to vector<16x128xbf16>
    %cst_14 = arith.constant dense<0.000000e+00> : vector<128x128xf32>
    %18 = tpu.matmul %15, %17, %cst_14 {dimension_numbers = #tpu.dot_dimension_numbers<[1], [0], [0], [1], [0, 0, 1, 1], [], []>} : vector<128x16xbf16>, vector<16x128xbf16>, vector<128x128xf32> -> vector<128x128xf32>
    %19 = arith.addf %10, %18 : vector<128x128xf32>
    %c0_i32_15 = arith.constant 0 : i32
    %20 = arith.addi %0, %c0_i32_15 : i32
    %c0_16 = arith.constant 0 : index
    %c0_17 = arith.constant 0 : index
    %21 = arith.index_cast %20 : i32 to index
    %c2 = arith.constant 2 : index
    %c0_18 = arith.constant 0 : index
    %22 = vector.load %arg2[%c0_16, %c0_17, %21, %c2, %c0_18] : memref<1x1x18x18x16xbf16, #tpu.memory_space<vmem>>, vector<1x1x8x16x16xbf16>
    %23 = vector.shape_cast %22 : vector<1x1x8x16x16xbf16> to vector<8x16x16xbf16>
    %24 = vector.shape_cast %23 : vector<8x16x16xbf16> to vector<128x16xbf16>
    %c2_19 = arith.constant 2 : index
    %c0_20 = arith.constant 0 : index
    %c0_21 = arith.constant 0 : index
    %25 = vector.load %arg3[%c2_19, %c0_20, %c0_21] : memref<9x16x128xbf16, #tpu.memory_space<vmem>>, vector<1x16x128xbf16>
    %26 = vector.shape_cast %25 : vector<1x16x128xbf16> to vector<16x128xbf16>
    %cst_22 = arith.constant dense<0.000000e+00> : vector<128x128xf32>
    %27 = tpu.matmul %24, %26, %cst_22 {dimension_numbers = #tpu.dot_dimension_numbers<[1], [0], [0], [1], [0, 0, 1, 1], [], []>} : vector<128x16xbf16>, vector<16x128xbf16>, vector<128x128xf32> -> vector<128x128xf32>
    %28 = arith.addf %19, %27 : vector<128x128xf32>
    %c1_i32 = arith.constant 1 : i32
    %29 = arith.addi %0, %c1_i32 : i32
    %c0_23 = arith.constant 0 : index
    %c0_24 = arith.constant 0 : index
    %30 = arith.index_cast %29 : i32 to index
    %c0_25 = arith.constant 0 : index
    %c0_26 = arith.constant 0 : index
    %31 = vector.load %arg2[%c0_23, %c0_24, %30, %c0_25, %c0_26] : memref<1x1x18x18x16xbf16, #tpu.memory_space<vmem>>, vector<1x1x8x16x16xbf16>
    %32 = vector.shape_cast %31 : vector<1x1x8x16x16xbf16> to vector<8x16x16xbf16>
    %33 = vector.shape_cast %32 : vector<8x16x16xbf16> to vector<128x16xbf16>
    %c3 = arith.constant 3 : index
    %c0_27 = arith.constant 0 : index
    %c0_28 = arith.constant 0 : index
    %34 = vector.load %arg3[%c3, %c0_27, %c0_28] : memref<9x16x128xbf16, #tpu.memory_space<vmem>>, vector<1x16x128xbf16>
    %35 = vector.shape_cast %34 : vector<1x16x128xbf16> to vector<16x128xbf16>
    %cst_29 = arith.constant dense<0.000000e+00> : vector<128x128xf32>
    %36 = tpu.matmul %33, %35, %cst_29 {dimension_numbers = #tpu.dot_dimension_numbers<[1], [0], [0], [1], [0, 0, 1, 1], [], []>} : vector<128x16xbf16>, vector<16x128xbf16>, vector<128x128xf32> -> vector<128x128xf32>
    %37 = arith.addf %28, %36 : vector<128x128xf32>
    %c1_i32_30 = arith.constant 1 : i32
    %38 = arith.addi %0, %c1_i32_30 : i32
    %c0_31 = arith.constant 0 : index
    %c0_32 = arith.constant 0 : index
    %39 = arith.index_cast %38 : i32 to index
    %c1_33 = arith.constant 1 : index
    %c0_34 = arith.constant 0 : index
    %40 = vector.load %arg2[%c0_31, %c0_32, %39, %c1_33, %c0_34] : memref<1x1x18x18x16xbf16, #tpu.memory_space<vmem>>, vector<1x1x8x16x16xbf16>
    %41 = vector.shape_cast %40 : vector<1x1x8x16x16xbf16> to vector<8x16x16xbf16>
    %42 = vector.shape_cast %41 : vector<8x16x16xbf16> to vector<128x16xbf16>
    %c4 = arith.constant 4 : index
    %c0_35 = arith.constant 0 : index
    %c0_36 = arith.constant 0 : index
    %43 = vector.load %arg3[%c4, %c0_35, %c0_36] : memref<9x16x128xbf16, #tpu.memory_space<vmem>>, vector<1x16x128xbf16>
    %44 = vector.shape_cast %43 : vector<1x16x128xbf16> to vector<16x128xbf16>
    %cst_37 = arith.constant dense<0.000000e+00> : vector<128x128xf32>
    %45 = tpu.matmul %42, %44, %cst_37 {dimension_numbers = #tpu.dot_dimension_numbers<[1], [0], [0], [1], [0, 0, 1, 1], [], []>} : vector<128x16xbf16>, vector<16x128xbf16>, vector<128x128xf32> -> vector<128x128xf32>
    %46 = arith.addf %37, %45 : vector<128x128xf32>
    %c1_i32_38 = arith.constant 1 : i32
    %47 = arith.addi %0, %c1_i32_38 : i32
    %c0_39 = arith.constant 0 : index
    %c0_40 = arith.constant 0 : index
    %48 = arith.index_cast %47 : i32 to index
    %c2_41 = arith.constant 2 : index
    %c0_42 = arith.constant 0 : index
    %49 = vector.load %arg2[%c0_39, %c0_40, %48, %c2_41, %c0_42] : memref<1x1x18x18x16xbf16, #tpu.memory_space<vmem>>, vector<1x1x8x16x16xbf16>
    %50 = vector.shape_cast %49 : vector<1x1x8x16x16xbf16> to vector<8x16x16xbf16>
    %51 = vector.shape_cast %50 : vector<8x16x16xbf16> to vector<128x16xbf16>
    %c5 = arith.constant 5 : index
    %c0_43 = arith.constant 0 : index
    %c0_44 = arith.constant 0 : index
    %52 = vector.load %arg3[%c5, %c0_43, %c0_44] : memref<9x16x128xbf16, #tpu.memory_space<vmem>>, vector<1x16x128xbf16>
    %53 = vector.shape_cast %52 : vector<1x16x128xbf16> to vector<16x128xbf16>
    %cst_45 = arith.constant dense<0.000000e+00> : vector<128x128xf32>
    %54 = tpu.matmul %51, %53, %cst_45 {dimension_numbers = #tpu.dot_dimension_numbers<[1], [0], [0], [1], [0, 0, 1, 1], [], []>} : vector<128x16xbf16>, vector<16x128xbf16>, vector<128x128xf32> -> vector<128x128xf32>
    %55 = arith.addf %46, %54 : vector<128x128xf32>
    %c2_i32 = arith.constant 2 : i32
    %56 = arith.addi %0, %c2_i32 : i32
    %c0_46 = arith.constant 0 : index
    %c0_47 = arith.constant 0 : index
    %57 = arith.index_cast %56 : i32 to index
    %c0_48 = arith.constant 0 : index
    %c0_49 = arith.constant 0 : index
    %58 = vector.load %arg2[%c0_46, %c0_47, %57, %c0_48, %c0_49] : memref<1x1x18x18x16xbf16, #tpu.memory_space<vmem>>, vector<1x1x8x16x16xbf16>
    %59 = vector.shape_cast %58 : vector<1x1x8x16x16xbf16> to vector<8x16x16xbf16>
    %60 = vector.shape_cast %59 : vector<8x16x16xbf16> to vector<128x16xbf16>
    %c6 = arith.constant 6 : index
    %c0_50 = arith.constant 0 : index
    %c0_51 = arith.constant 0 : index
    %61 = vector.load %arg3[%c6, %c0_50, %c0_51] : memref<9x16x128xbf16, #tpu.memory_space<vmem>>, vector<1x16x128xbf16>
    %62 = vector.shape_cast %61 : vector<1x16x128xbf16> to vector<16x128xbf16>
    %cst_52 = arith.constant dense<0.000000e+00> : vector<128x128xf32>
    %63 = tpu.matmul %60, %62, %cst_52 {dimension_numbers = #tpu.dot_dimension_numbers<[1], [0], [0], [1], [0, 0, 1, 1], [], []>} : vector<128x16xbf16>, vector<16x128xbf16>, vector<128x128xf32> -> vector<128x128xf32>
    %64 = arith.addf %55, %63 : vector<128x128xf32>
    %c2_i32_53 = arith.constant 2 : i32
    %65 = arith.addi %0, %c2_i32_53 : i32
    %c0_54 = arith.constant 0 : index
    %c0_55 = arith.constant 0 : index
    %66 = arith.index_cast %65 : i32 to index
    %c1_56 = arith.constant 1 : index
    %c0_57 = arith.constant 0 : index
    %67 = vector.load %arg2[%c0_54, %c0_55, %66, %c1_56, %c0_57] : memref<1x1x18x18x16xbf16, #tpu.memory_space<vmem>>, vector<1x1x8x16x16xbf16>
    %68 = vector.shape_cast %67 : vector<1x1x8x16x16xbf16> to vector<8x16x16xbf16>
    %69 = vector.shape_cast %68 : vector<8x16x16xbf16> to vector<128x16xbf16>
    %c7 = arith.constant 7 : index
    %c0_58 = arith.constant 0 : index
    %c0_59 = arith.constant 0 : index
    %70 = vector.load %arg3[%c7, %c0_58, %c0_59] : memref<9x16x128xbf16, #tpu.memory_space<vmem>>, vector<1x16x128xbf16>
    %71 = vector.shape_cast %70 : vector<1x16x128xbf16> to vector<16x128xbf16>
    %cst_60 = arith.constant dense<0.000000e+00> : vector<128x128xf32>
    %72 = tpu.matmul %69, %71, %cst_60 {dimension_numbers = #tpu.dot_dimension_numbers<[1], [0], [0], [1], [0, 0, 1, 1], [], []>} : vector<128x16xbf16>, vector<16x128xbf16>, vector<128x128xf32> -> vector<128x128xf32>
    %73 = arith.addf %64, %72 : vector<128x128xf32>
    %c2_i32_61 = arith.constant 2 : i32
    %74 = arith.addi %0, %c2_i32_61 : i32
    %c0_62 = arith.constant 0 : index
    %c0_63 = arith.constant 0 : index
    %75 = arith.index_cast %74 : i32 to index
    %c2_64 = arith.constant 2 : index
    %c0_65 = arith.constant 0 : index
    %76 = vector.load %arg2[%c0_62, %c0_63, %75, %c2_64, %c0_65] : memref<1x1x18x18x16xbf16, #tpu.memory_space<vmem>>, vector<1x1x8x16x16xbf16>
    %77 = vector.shape_cast %76 : vector<1x1x8x16x16xbf16> to vector<8x16x16xbf16>
    %78 = vector.shape_cast %77 : vector<8x16x16xbf16> to vector<128x16xbf16>
    %c8 = arith.constant 8 : index
    %c0_66 = arith.constant 0 : index
    %c0_67 = arith.constant 0 : index
    %79 = vector.load %arg3[%c8, %c0_66, %c0_67] : memref<9x16x128xbf16, #tpu.memory_space<vmem>>, vector<1x16x128xbf16>
    %80 = vector.shape_cast %79 : vector<1x16x128xbf16> to vector<16x128xbf16>
    %cst_68 = arith.constant dense<0.000000e+00> : vector<128x128xf32>
    %81 = tpu.matmul %78, %80, %cst_68 {dimension_numbers = #tpu.dot_dimension_numbers<[1], [0], [0], [1], [0, 0, 1, 1], [], []>} : vector<128x16xbf16>, vector<16x128xbf16>, vector<128x128xf32> -> vector<128x128xf32>
    %82 = arith.addf %73, %81 : vector<128x128xf32>
    %c0_69 = arith.constant 0 : index
    %c0_70 = arith.constant 0 : index
    %83 = vector.load %arg4[%c0_69, %c0_70] : memref<1x128xf32, #tpu.memory_space<vmem>>, vector<1x128xf32>
    %84 = vector.broadcast %83 : vector<1x128xf32> to vector<128x128xf32>
    %85 = arith.addf %82, %84 : vector<128x128xf32>
    %cst_71 = arith.constant 0.000000e+00 : f32
    %86 = vector.broadcast %cst_71 : f32 to vector<128x128xf32>
    %87 = arith.maximumf %85, %86 : vector<128x128xf32>
    %88 = arith.truncf %87 : vector<128x128xf32> to vector<128x128xbf16>
    %c0_72 = arith.constant 0 : index
    %c0_73 = arith.constant 0 : index
    %c0_74 = arith.constant 0 : index
    %89 = vector.load %arg5[%c0_72, %c0_73, %c0_74] : memref<1x128x128xbf16, #tpu.memory_space<vmem>>, vector<1x128x128xbf16>
    %90 = vector.shape_cast %89 : vector<1x128x128xbf16> to vector<128x128xbf16>
    %91 = vector.shape_cast %88 : vector<128x128xbf16> to vector<1x128x128xbf16>
    tpu.vector_store %arg5[%c0_72, %c0_73, %c0_74], %91 {strides = array<i32>} : memref<1x128x128xbf16, #tpu.memory_space<vmem>>, vector<1x128x128xbf16>,
    return
  }
  func.func @transform_0(%arg0: i32, %arg1: i32) -> (i32, i32, i32, i32, i32) {
    %c0_i32 = arith.constant 0 : i32
    %c0_i32_0 = arith.constant 0 : i32
    %c0_i32_1 = arith.constant 0 : i32
    %c0_i32_2 = arith.constant 0 : i32
    %c0_i32_3 = arith.constant 0 : i32
    return %arg0, %c0_i32, %c0_i32_0, %c0_i32_1, %c0_i32_2 : i32, i32, i32, i32, i32
  }
  func.func @transform_1(%arg0: i32, %arg1: i32) -> (i32, i32, i32) {
    %c0_i32 = arith.constant 0 : i32
    %c0_i32_0 = arith.constant 0 : i32
    %c0_i32_1 = arith.constant 0 : i32
    %c0_i32_2 = arith.constant 0 : i32
    return %c0_i32, %c0_i32_0, %c0_i32_1 : i32, i32, i32
  }
  func.func @transform_2(%arg0: i32, %arg1: i32) -> (i32, i32) {
    %c0_i32 = arith.constant 0 : i32
    %c0_i32_0 = arith.constant 0 : i32
    %c0_i32_1 = arith.constant 0 : i32
    return %c0_i32, %c0_i32_0 : i32, i32
  }
  func.func @transform_3(%arg0: i32, %arg1: i32) -> (i32, i32, i32) {
    %c0_i32 = arith.constant 0 : i32
    %c0_i32_0 = arith.constant 0 : i32
    return %arg0, %arg1, %c0_i32 : i32, i32, i32
  }
}

module attributes {stable_mosaic.version = 11 : i64} {
  func.func @_conv_fused_kernel(%arg0: i32, %arg1: i32, %arg2: memref<1x4x9x17x16xbf16, #tpu.memory_space<vmem>>, %arg3: memref<9x16x128xbf16, #tpu.memory_space<vmem>>, %arg4: memref<1x128xf32, #tpu.memory_space<vmem>>, %arg5: memref<1x64x128xf32, #tpu.memory_space<vmem>>) attributes {dimension_semantics = [#tpu.dimension_semantics<parallel>, #tpu.dimension_semantics<parallel>], iteration_bounds = array<i64: 2, 2>, scalar_prefetch = 0 : i64, scratch_operands = 0 : i64, tpu.core_type = #tpu.core_type<tc>, window_params = [{transform_indices = @transform_0, window_bounds = array<i64: 1, 4, 9, 17, 16>}, {pipeline_mode = #tpu.pipeline_mode<synchronous>, transform_indices = @transform_1, window_bounds = array<i64: 9, 16, 128>}, {pipeline_mode = #tpu.pipeline_mode<synchronous>, transform_indices = @transform_2, window_bounds = array<i64: 1, 128>}, {transform_indices = @transform_3, window_bounds = array<i64: 1, 64, 128>}]} {
    %c4_i32 = arith.constant 4 : i32
    %0 = arith.muli %arg1, %c4_i32 : i32
    %cst = arith.constant 0.000000e+00 : f32
    %1 = vector.broadcast %cst : f32 to vector<64x128xf32>
    %c0_i32 = arith.constant 0 : i32
    %2 = arith.addi %0, %c0_i32 : i32
    %c0 = arith.constant 0 : index
    %c0_0 = arith.constant 0 : index
    %3 = arith.index_cast %2 : i32 to index
    %c0_1 = arith.constant 0 : index
    %c0_2 = arith.constant 0 : index
    %4 = vector.load %arg2[%c0, %c0_0, %3, %c0_1, %c0_2] : memref<1x4x9x17x16xbf16, #tpu.memory_space<vmem>>, vector<1x1x4x16x16xbf16>
    %5 = vector.shape_cast %4 : vector<1x1x4x16x16xbf16> to vector<4x16x16xbf16>
    %6 = vector.shape_cast %5 : vector<4x16x16xbf16> to vector<64x16xbf16>
    %c0_3 = arith.constant 0 : index
    %c0_4 = arith.constant 0 : index
    %c0_5 = arith.constant 0 : index
    %7 = vector.load %arg3[%c0_3, %c0_4, %c0_5] : memref<9x16x128xbf16, #tpu.memory_space<vmem>>, vector<1x16x128xbf16>
    %8 = vector.shape_cast %7 : vector<1x16x128xbf16> to vector<16x128xbf16>
    %cst_6 = arith.constant dense<0.000000e+00> : vector<64x128xf32>
    %9 = tpu.matmul %6, %8, %cst_6 {dimension_numbers = #tpu.dot_dimension_numbers<[1], [0], [0], [1], [0, 0, 1, 1], [], []>} : vector<64x16xbf16>, vector<16x128xbf16>, vector<64x128xf32> -> vector<64x128xf32>
    %10 = arith.addf %1, %9 : vector<64x128xf32>
    %c0_i32_7 = arith.constant 0 : i32
    %11 = arith.addi %0, %c0_i32_7 : i32
    %c0_8 = arith.constant 0 : index
    %c1 = arith.constant 1 : index
    %12 = arith.index_cast %11 : i32 to index
    %c0_9 = arith.constant 0 : index
    %c0_10 = arith.constant 0 : index
    %13 = vector.load %arg2[%c0_8, %c1, %12, %c0_9, %c0_10] : memref<1x4x9x17x16xbf16, #tpu.memory_space<vmem>>, vector<1x1x4x16x16xbf16>
    %14 = vector.shape_cast %13 : vector<1x1x4x16x16xbf16> to vector<4x16x16xbf16>
    %15 = vector.shape_cast %14 : vector<4x16x16xbf16> to vector<64x16xbf16>
    %c1_11 = arith.constant 1 : index
    %c0_12 = arith.constant 0 : index
    %c0_13 = arith.constant 0 : index
    %16 = vector.load %arg3[%c1_11, %c0_12, %c0_13] : memref<9x16x128xbf16, #tpu.memory_space<vmem>>, vector<1x16x128xbf16>
    %17 = vector.shape_cast %16 : vector<1x16x128xbf16> to vector<16x128xbf16>
    %cst_14 = arith.constant dense<0.000000e+00> : vector<64x128xf32>
    %18 = tpu.matmul %15, %17, %cst_14 {dimension_numbers = #tpu.dot_dimension_numbers<[1], [0], [0], [1], [0, 0, 1, 1], [], []>} : vector<64x16xbf16>, vector<16x128xbf16>, vector<64x128xf32> -> vector<64x128xf32>
    %19 = arith.addf %10, %18 : vector<64x128xf32>
    %c0_i32_15 = arith.constant 0 : i32
    %20 = arith.addi %0, %c0_i32_15 : i32
    %c0_16 = arith.constant 0 : index
    %c0_17 = arith.constant 0 : index
    %21 = arith.index_cast %20 : i32 to index
    %c1_18 = arith.constant 1 : index
    %c0_19 = arith.constant 0 : index
    %22 = vector.load %arg2[%c0_16, %c0_17, %21, %c1_18, %c0_19] : memref<1x4x9x17x16xbf16, #tpu.memory_space<vmem>>, vector<1x1x4x16x16xbf16>
    %23 = vector.shape_cast %22 : vector<1x1x4x16x16xbf16> to vector<4x16x16xbf16>
    %24 = vector.shape_cast %23 : vector<4x16x16xbf16> to vector<64x16xbf16>
    %c2 = arith.constant 2 : index
    %c0_20 = arith.constant 0 : index
    %c0_21 = arith.constant 0 : index
    %25 = vector.load %arg3[%c2, %c0_20, %c0_21] : memref<9x16x128xbf16, #tpu.memory_space<vmem>>, vector<1x16x128xbf16>
    %26 = vector.shape_cast %25 : vector<1x16x128xbf16> to vector<16x128xbf16>
    %cst_22 = arith.constant dense<0.000000e+00> : vector<64x128xf32>
    %27 = tpu.matmul %24, %26, %cst_22 {dimension_numbers = #tpu.dot_dimension_numbers<[1], [0], [0], [1], [0, 0, 1, 1], [], []>} : vector<64x16xbf16>, vector<16x128xbf16>, vector<64x128xf32> -> vector<64x128xf32>
    %28 = arith.addf %19, %27 : vector<64x128xf32>
    %c0_i32_23 = arith.constant 0 : i32
    %29 = arith.addi %0, %c0_i32_23 : i32
    %c0_24 = arith.constant 0 : index
    %c2_25 = arith.constant 2 : index
    %30 = arith.index_cast %29 : i32 to index
    %c0_26 = arith.constant 0 : index
    %c0_27 = arith.constant 0 : index
    %31 = vector.load %arg2[%c0_24, %c2_25, %30, %c0_26, %c0_27] : memref<1x4x9x17x16xbf16, #tpu.memory_space<vmem>>, vector<1x1x4x16x16xbf16>
    %32 = vector.shape_cast %31 : vector<1x1x4x16x16xbf16> to vector<4x16x16xbf16>
    %33 = vector.shape_cast %32 : vector<4x16x16xbf16> to vector<64x16xbf16>
    %c3 = arith.constant 3 : index
    %c0_28 = arith.constant 0 : index
    %c0_29 = arith.constant 0 : index
    %34 = vector.load %arg3[%c3, %c0_28, %c0_29] : memref<9x16x128xbf16, #tpu.memory_space<vmem>>, vector<1x16x128xbf16>
    %35 = vector.shape_cast %34 : vector<1x16x128xbf16> to vector<16x128xbf16>
    %cst_30 = arith.constant dense<0.000000e+00> : vector<64x128xf32>
    %36 = tpu.matmul %33, %35, %cst_30 {dimension_numbers = #tpu.dot_dimension_numbers<[1], [0], [0], [1], [0, 0, 1, 1], [], []>} : vector<64x16xbf16>, vector<16x128xbf16>, vector<64x128xf32> -> vector<64x128xf32>
    %37 = arith.addf %28, %36 : vector<64x128xf32>
    %c0_i32_31 = arith.constant 0 : i32
    %38 = arith.addi %0, %c0_i32_31 : i32
    %c0_32 = arith.constant 0 : index
    %c3_33 = arith.constant 3 : index
    %39 = arith.index_cast %38 : i32 to index
    %c0_34 = arith.constant 0 : index
    %c0_35 = arith.constant 0 : index
    %40 = vector.load %arg2[%c0_32, %c3_33, %39, %c0_34, %c0_35] : memref<1x4x9x17x16xbf16, #tpu.memory_space<vmem>>, vector<1x1x4x16x16xbf16>
    %41 = vector.shape_cast %40 : vector<1x1x4x16x16xbf16> to vector<4x16x16xbf16>
    %42 = vector.shape_cast %41 : vector<4x16x16xbf16> to vector<64x16xbf16>
    %c4 = arith.constant 4 : index
    %c0_36 = arith.constant 0 : index
    %c0_37 = arith.constant 0 : index
    %43 = vector.load %arg3[%c4, %c0_36, %c0_37] : memref<9x16x128xbf16, #tpu.memory_space<vmem>>, vector<1x16x128xbf16>
    %44 = vector.shape_cast %43 : vector<1x16x128xbf16> to vector<16x128xbf16>
    %cst_38 = arith.constant dense<0.000000e+00> : vector<64x128xf32>
    %45 = tpu.matmul %42, %44, %cst_38 {dimension_numbers = #tpu.dot_dimension_numbers<[1], [0], [0], [1], [0, 0, 1, 1], [], []>} : vector<64x16xbf16>, vector<16x128xbf16>, vector<64x128xf32> -> vector<64x128xf32>
    %46 = arith.addf %37, %45 : vector<64x128xf32>
    %c0_i32_39 = arith.constant 0 : i32
    %47 = arith.addi %0, %c0_i32_39 : i32
    %c0_40 = arith.constant 0 : index
    %c2_41 = arith.constant 2 : index
    %48 = arith.index_cast %47 : i32 to index
    %c1_42 = arith.constant 1 : index
    %c0_43 = arith.constant 0 : index
    %49 = vector.load %arg2[%c0_40, %c2_41, %48, %c1_42, %c0_43] : memref<1x4x9x17x16xbf16, #tpu.memory_space<vmem>>, vector<1x1x4x16x16xbf16>
    %50 = vector.shape_cast %49 : vector<1x1x4x16x16xbf16> to vector<4x16x16xbf16>
    %51 = vector.shape_cast %50 : vector<4x16x16xbf16> to vector<64x16xbf16>
    %c5 = arith.constant 5 : index
    %c0_44 = arith.constant 0 : index
    %c0_45 = arith.constant 0 : index
    %52 = vector.load %arg3[%c5, %c0_44, %c0_45] : memref<9x16x128xbf16, #tpu.memory_space<vmem>>, vector<1x16x128xbf16>
    %53 = vector.shape_cast %52 : vector<1x16x128xbf16> to vector<16x128xbf16>
    %cst_46 = arith.constant dense<0.000000e+00> : vector<64x128xf32>
    %54 = tpu.matmul %51, %53, %cst_46 {dimension_numbers = #tpu.dot_dimension_numbers<[1], [0], [0], [1], [0, 0, 1, 1], [], []>} : vector<64x16xbf16>, vector<16x128xbf16>, vector<64x128xf32> -> vector<64x128xf32>
    %55 = arith.addf %46, %54 : vector<64x128xf32>
    %c1_i32 = arith.constant 1 : i32
    %56 = arith.addi %0, %c1_i32 : i32
    %c0_47 = arith.constant 0 : index
    %c0_48 = arith.constant 0 : index
    %57 = arith.index_cast %56 : i32 to index
    %c0_49 = arith.constant 0 : index
    %c0_50 = arith.constant 0 : index
    %58 = vector.load %arg2[%c0_47, %c0_48, %57, %c0_49, %c0_50] : memref<1x4x9x17x16xbf16, #tpu.memory_space<vmem>>, vector<1x1x4x16x16xbf16>
    %59 = vector.shape_cast %58 : vector<1x1x4x16x16xbf16> to vector<4x16x16xbf16>
    %60 = vector.shape_cast %59 : vector<4x16x16xbf16> to vector<64x16xbf16>
    %c6 = arith.constant 6 : index
    %c0_51 = arith.constant 0 : index
    %c0_52 = arith.constant 0 : index
    %61 = vector.load %arg3[%c6, %c0_51, %c0_52] : memref<9x16x128xbf16, #tpu.memory_space<vmem>>, vector<1x16x128xbf16>
    %62 = vector.shape_cast %61 : vector<1x16x128xbf16> to vector<16x128xbf16>
    %cst_53 = arith.constant dense<0.000000e+00> : vector<64x128xf32>
    %63 = tpu.matmul %60, %62, %cst_53 {dimension_numbers = #tpu.dot_dimension_numbers<[1], [0], [0], [1], [0, 0, 1, 1], [], []>} : vector<64x16xbf16>, vector<16x128xbf16>, vector<64x128xf32> -> vector<64x128xf32>
    %64 = arith.addf %55, %63 : vector<64x128xf32>
    %c1_i32_54 = arith.constant 1 : i32
    %65 = arith.addi %0, %c1_i32_54 : i32
    %c0_55 = arith.constant 0 : index
    %c1_56 = arith.constant 1 : index
    %66 = arith.index_cast %65 : i32 to index
    %c0_57 = arith.constant 0 : index
    %c0_58 = arith.constant 0 : index
    %67 = vector.load %arg2[%c0_55, %c1_56, %66, %c0_57, %c0_58] : memref<1x4x9x17x16xbf16, #tpu.memory_space<vmem>>, vector<1x1x4x16x16xbf16>
    %68 = vector.shape_cast %67 : vector<1x1x4x16x16xbf16> to vector<4x16x16xbf16>
    %69 = vector.shape_cast %68 : vector<4x16x16xbf16> to vector<64x16xbf16>
    %c7 = arith.constant 7 : index
    %c0_59 = arith.constant 0 : index
    %c0_60 = arith.constant 0 : index
    %70 = vector.load %arg3[%c7, %c0_59, %c0_60] : memref<9x16x128xbf16, #tpu.memory_space<vmem>>, vector<1x16x128xbf16>
    %71 = vector.shape_cast %70 : vector<1x16x128xbf16> to vector<16x128xbf16>
    %cst_61 = arith.constant dense<0.000000e+00> : vector<64x128xf32>
    %72 = tpu.matmul %69, %71, %cst_61 {dimension_numbers = #tpu.dot_dimension_numbers<[1], [0], [0], [1], [0, 0, 1, 1], [], []>} : vector<64x16xbf16>, vector<16x128xbf16>, vector<64x128xf32> -> vector<64x128xf32>
    %73 = arith.addf %64, %72 : vector<64x128xf32>
    %c1_i32_62 = arith.constant 1 : i32
    %74 = arith.addi %0, %c1_i32_62 : i32
    %c0_63 = arith.constant 0 : index
    %c0_64 = arith.constant 0 : index
    %75 = arith.index_cast %74 : i32 to index
    %c1_65 = arith.constant 1 : index
    %c0_66 = arith.constant 0 : index
    %76 = vector.load %arg2[%c0_63, %c0_64, %75, %c1_65, %c0_66] : memref<1x4x9x17x16xbf16, #tpu.memory_space<vmem>>, vector<1x1x4x16x16xbf16>
    %77 = vector.shape_cast %76 : vector<1x1x4x16x16xbf16> to vector<4x16x16xbf16>
    %78 = vector.shape_cast %77 : vector<4x16x16xbf16> to vector<64x16xbf16>
    %c8 = arith.constant 8 : index
    %c0_67 = arith.constant 0 : index
    %c0_68 = arith.constant 0 : index
    %79 = vector.load %arg3[%c8, %c0_67, %c0_68] : memref<9x16x128xbf16, #tpu.memory_space<vmem>>, vector<1x16x128xbf16>
    %80 = vector.shape_cast %79 : vector<1x16x128xbf16> to vector<16x128xbf16>
    %cst_69 = arith.constant dense<0.000000e+00> : vector<64x128xf32>
    %81 = tpu.matmul %78, %80, %cst_69 {dimension_numbers = #tpu.dot_dimension_numbers<[1], [0], [0], [1], [0, 0, 1, 1], [], []>} : vector<64x16xbf16>, vector<16x128xbf16>, vector<64x128xf32> -> vector<64x128xf32>
    %82 = arith.addf %73, %81 : vector<64x128xf32>
    %c0_70 = arith.constant 0 : index
    %c0_71 = arith.constant 0 : index
    %83 = vector.load %arg4[%c0_70, %c0_71] : memref<1x128xf32, #tpu.memory_space<vmem>>, vector<1x128xf32>
    %84 = vector.broadcast %83 : vector<1x128xf32> to vector<64x128xf32>
    %85 = arith.addf %82, %84 : vector<64x128xf32>
    %c0_72 = arith.constant 0 : index
    %c0_73 = arith.constant 0 : index
    %c0_74 = arith.constant 0 : index
    %86 = vector.load %arg5[%c0_72, %c0_73, %c0_74] : memref<1x64x128xf32, #tpu.memory_space<vmem>>, vector<1x64x128xf32>
    %87 = vector.shape_cast %86 : vector<1x64x128xf32> to vector<64x128xf32>
    %88 = vector.shape_cast %85 : vector<64x128xf32> to vector<1x64x128xf32>
    tpu.vector_store %arg5[%c0_72, %c0_73, %c0_74], %88 {strides = array<i32>} : memref<1x64x128xf32, #tpu.memory_space<vmem>>, vector<1x64x128xf32>,
    return
  }
  func.func @transform_0(%arg0: i32, %arg1: i32) -> (i32, i32, i32, i32, i32) {
    %c0_i32 = arith.constant 0 : i32
    %c0_i32_0 = arith.constant 0 : i32
    %c0_i32_1 = arith.constant 0 : i32
    %c0_i32_2 = arith.constant 0 : i32
    %c0_i32_3 = arith.constant 0 : i32
    return %arg0, %c0_i32, %c0_i32_0, %c0_i32_1, %c0_i32_2 : i32, i32, i32, i32, i32
  }
  func.func @transform_1(%arg0: i32, %arg1: i32) -> (i32, i32, i32) {
    %c0_i32 = arith.constant 0 : i32
    %c0_i32_0 = arith.constant 0 : i32
    %c0_i32_1 = arith.constant 0 : i32
    %c0_i32_2 = arith.constant 0 : i32
    return %c0_i32, %c0_i32_0, %c0_i32_1 : i32, i32, i32
  }
  func.func @transform_2(%arg0: i32, %arg1: i32) -> (i32, i32) {
    %c0_i32 = arith.constant 0 : i32
    %c0_i32_0 = arith.constant 0 : i32
    %c0_i32_1 = arith.constant 0 : i32
    return %c0_i32, %c0_i32_0 : i32, i32
  }
  func.func @transform_3(%arg0: i32, %arg1: i32) -> (i32, i32, i32) {
    %c0_i32 = arith.constant 0 : i32
    %c0_i32_0 = arith.constant 0 : i32
    return %arg0, %arg1, %c0_i32 : i32, i32, i32
  }
}

</mosaic_0001>

<bundles_post_ra>
// kernel: _forward_impl.2
= control target key start
LH: loop header
LB: loop body
LE: loop exit
PB: predicated region body
PF: predicated region fallthrough
CT: control target
= control target key end

     0   :  { %s3804_s12 = smov 0   ;;  %s3806_s13 = smov 0   ;;  %s4731_s0 = inlined_call_operand.vmem [shape: bf16[2,1,18,18,16], index: 0, kind: input, shape index: {}]   ;;  %s4732_s1 = inlined_call_operand.vmem [shape: bf16[9,16,128], index: 1, kind: input, shape index: {}]   ;;  %s4733_s2 = inlined_call_operand.vmem [shape: f32[1,128], index: 2, kind: input, shape index: {}]   ;;  %s4734_s3 = inlined_call_operand.vmem [shape: bf16[2,256,128], index: 3, kind: output, shape index: {}]  }
   0x1   :  { %s3808_s14 = smov 0   ;;  %s3810_s15 = smov 0  }
   0x2   :  { %s3812_s16 = smov 0  }
   0x3 LB: > { %s22_s17 = sadd.s32 1, %s3774_s14  ;;  %s25_s18 = sadd.s32 1, %s3778_s15  ;;  %s3782_s16 = sphi %s3812_s16, %s13_s16   ;;  %s3778_s15 = sphi %s3810_s15, %s4760_s15   ;;  %s3774_s14 = sphi %s3808_s14, %s4759_s14   ;;  %s3770_s13 = sphi %s3806_s13, %s4758_s13   ;;  %s3766_s12 = sphi %s3804_s12, %s4757_s12  }
   0x4   : > { %p23_p0 = scmp.ge.s32.totalorder %s22_s17, 2  ;;  %p2912_p1 = scmp.ge.s32.totalorder %s3782_s16, 1 }
   0x5   : > { %p151_p2 = scmp.lt.s32.totalorder %s3782_s16, 5 }
   0x6   : > { %s4762_s17 = smov (%p23_p0, %s22_s17), 0  ;;  %s4764_s18 = smov (!%p23_p0, %s25_s18), %s3778_s15 }
   0x7   : > { %p152_p3 = pnand %p2912_p1, %p151_p2  ;;  %p27_p4 = scmp.ge.s32.totalorder %s4764_s18, 2 }
   0x9   : > { %s4766_s18 = smov (%p27_p4, %s4764_s18), 0  ;;  %155 = sbr.rel (%p152_p3) target bundleno = 423 (0x1a7), region = 32 }
  0x10   : > { %v3710_v0 = vld [vmem:[%s4732_s1 + $0x8] sm:$0xff]   ;;  %p179_p5 = scmp.lt.s32.totalorder %s3770_s13, 1  ;;  %v3711_v1 = vld [vmem:[%s4732_s1 + $0x20] sm:$0xff]   ;;  %s3232_s23 = smul.u32 96, %s3766_s12  ;;  %vm225_vm0 = vsmask.f32 3328 }
  0x11   : > { %3377 = vmatprep.subr.bf16.mxu1 %v3710_v0  ;;  %3449 = vmatprep.subr.bf16.mxu0 %v3711_v1  ;;  %v3849_v2 = vld [vmem:[%s4732_s1] sm:$0xff]   ;;  %v3854_v3 = vld [vmem:[%s4732_s1 + $0x28] sm:$0xff]   ;;  %vm226_vm1 = vsmask.f32 7440  ;;  %vm453_vm3 = vcmask 130048   ;;  %vm766_vm4 = vcmask 1042432  }
  0x12   : > { %s4768_s13 = smov (!%p179_p5, %s3770_s13), 1  ;;  %3378 = vmatpush3.bf16.msra.mxu1 %v3710_v0  ;;  %3450 = vmatpush3.bf16.msra.mxu0 %v3711_v1  ;;  %vm3892_vm2 = vmor %vm225_vm0, %vm226_vm1  ;;  %vm767_vm5 = vcmask 1046532   ;;  %s2914_s25 = sshll.u32 %s3766_s12, 4 }
  0x13   : > { %s3669_s24 = smul.u32 216, %s4768_s13  ;;  %3395 = vmatprep.subr.bf16.mxu1 %v3849_v2  ;;  %3467 = vmatprep.subr.bf16.mxu0 %v3854_v3  ;;  %vm4043_vm6 = vmor %vm766_vm4, %vm767_vm5  ;;  %p187_p6 = scmp.lt.s32.totalorder %s2914_s25, 31 }
  0x14   : > { %s2915_s26 = sshll.u32 %s4768_s13, 5 }
  0x15   : > { %s183_s4 = scalar_lea.vmem %s4731_s0, %s3669_s24  ;;  %s4770_s25 = smov (!%p187_p6, %s2914_s25), 31 }
  0x16   : > { %s3860_s5 = scalar_lea.vmem %s183_s4, %s3232_s23  ;;  %s190_s29 = sadd.s32 %s2915_s26, %s4770_s25 }
  0x17   : > { %v3864_v4 = vld [vmem:[%s3860_s5] sm:$0xf]  ;;  %v3867_v5 = vld [vmem:[%s3860_s5 + $0x4] sm:$0xf]  ;;  %v3870_v6 = vld [vmem:[%s3860_s5 + $0x8] sm:$0x1] }
  0x18   : > { %v229_v7 = vshrl.u32 %v3864_v4, 16  ;;  %v232_v8 = vshll.u32 %v3864_v4, 16  ;;  %v238_v9 = vshll.u32 %v3867_v5, 16  ;;  %v242_v10 = vshrl.u32 %v3867_v5, 16  ;;  %v3020_v11 = vld [vmem:[%s3860_s5 + $0xc] sm:$0xf] }
  0x19   : > { %v248_v12 = vshll.u32 %v3870_v6, 16  ;;  %v3879_v13 = vld [vmem:[%s3860_s5 + $0x10] sm:$0xf]  ;;  %v3882_v14 = vld [vmem:[%s3860_s5 + $0x14] sm:$0x1]  ;;  %v1226_v20 = vshrl.u32 %v3020_v11, 16 }
  0x1a   : > { %v231_v15 = vrot.slane %v229_v7, 4  ;;  %v234_v16 = vrot.slane %v232_v8, 5  ;;  %v240_v17 = vrot.slane %v238_v9, 5  ;;  %v244_v18 = vrot.slane %v242_v10, 4  ;;  %v3888_v27 = vld [vmem:[%s3860_s5 + $0xc] sm:$0xf] }
  0x1b   : > { %v250_v19 = vrot.slane %v248_v12, 5  ;;  %v1229_v21 = vshll.u32 %v3020_v11, 16  ;;  %v1235_v22 = vshll.u32 %v3879_v13, 16  ;;  %v1239_v25 = vshrl.u32 %v3879_v13, 16  ;;  %v3897_v32 = vld [vmem:[%s3860_s5 + $0x10] sm:$0xf] }
  0x1c   : > { %v235_v23 = vor.u32 %v234_v16, %v231_v15  ;;  %v245_v24 = vor.u32 %v244_v18, %v240_v17  ;;  %v1245_v26 = vshll.u32 %v3882_v14, 16  ;;  %v1228_v29 = vrot.slane %v1226_v20, 4  ;;  %v3900_v38 = vld [vmem:[%s3860_s5 + $0x14] sm:$0x1]  ;;  %v3023_v49 = vld [vmem:[%s3860_s5 + $0x18] sm:$0xf] }
  0x1d   : > { %v1231_v30 = vrot.slane %v1229_v21, 5  ;;  %v1237_v31 = vrot.slane %v1235_v22, 5  ;;  %v1241_v35 = vrot.slane %v1239_v25, 4  ;;  %v253_v39 = vshrl.u32 %v3888_v27, 16  ;;  %v3913_v54 = vld [vmem:[%s3860_s5 + $0x1c] sm:$0xf] }
  0x1e   : > { %v236_v33 = vrot.slane %v235_v23, 4  ;;  %v246_v34 = vrot.slane %v245_v24, 4  ;;  %v1247_v37 = vrot.slane %v1245_v26, 5  ;;  %v256_v40 = vshll.u32 %v3888_v27, 16  ;;  %v3921_v59 = vld [vmem:[%s3860_s5 + $0x20] sm:$0x1] }
  0x1f   : > { %v1232_v36 = vor.u32 %v1231_v30, %v1228_v29  ;;  %v1242_v43 = vor.u32 %v1241_v35, %v1237_v31  ;;  %v262_v44 = vshll.u32 %v3897_v32, 16  ;;  %v255_v47 = vrot.slane %v253_v39, 4  ;;  %v3929_v15 = vld [vmem:[%s3860_s5 + $0x18] sm:$0xf]  ;;  %v3936_v20 = vld [vmem:[%s3860_s5 + $0x1c] sm:$0xf] }
  0x20   : > { %v241_v41 = vsel %vm3892_vm2, %v236_v33, %v240_v17  ;;  %v251_v42 = vsel %vm3892_vm2, %v246_v34, %v250_v19  ;;  %v258_v48 = vrot.slane %v256_v40, 5  ;;  %v266_v52 = vshrl.u32 %v3897_v32, 16  ;;  %v3944_v29 = vld [vmem:[%s3860_s5 + $0x20] sm:$0x1]  ;;  %s2916_s12 = sshll.u32 %s190_s29, 2 }
  0x21   : > { %v2922_v45 = vcombine.low %v241_v41, %v251_v42  ;;  %v1233_v46 = vrot.slane %v1232_v36, 4  ;;  %v1243_v50 = vrot.slane %v1242_v43, 4  ;;  %v264_v51 = vrot.slane %v262_v44, 5  ;;  %v3954_v43 = vld [vmem:[%s3860_s5 + $0x28] sm:$0xf]  ;;  %v3959_v44 = vld [vmem:[%s4732_s1 + $0x10] sm:$0xff]   ;;  %s4694_s4 = scalar_lea.vmem %s4734_s3, %s2916_s12 }
  0x22   : > { %v272_v53 = vshll.u32 %v3900_v38, 16  ;;  %v1621_v56 = vrot.slane %v3879_v13, 5  ;;  %v1624_v57 = vrot.slane %v3882_v14, 5  ;;  %v259_v58 = vor.u32 %v258_v48, %v255_v47  ;;  %v4081_v14 = vld [vmem:[%s3860_s5 + $0x50] sm:$0x1] }
  0x23   : > { %3379 = vmatprep.mubr.msk.bf16.mxu1 %vm453_vm3, %v2922_v45  ;;  %v1238_v55 = vsel %vm3892_vm2, %v1233_v46, %v1237_v31  ;;  %v1248_v60 = vsel %vm3892_vm2, %v1243_v50, %v1247_v37  ;;  %v268_v61 = vrot.slane %v266_v52, 4  ;;  %v1250_v63 = vshrl.u32 %v3023_v49, 16  ;;  %v3026_v37 = vld [vmem:[%s3860_s5 + $0x24] sm:$0xf] }
  0x24   : > { %v274_v62 = vrot.slane %v272_v53, 5  ;;  %v3046_v0 = vcombine.low %v1238_v55, %v1248_v60  ;;  %v260_v1 = vrot.slane %v259_v58, 4  ;;  %v1253_v7 = vshll.u32 %v3023_v49, 16 }
  0x25   : > { %v1259_v8 = vshll.u32 %v3913_v54, 16  ;;  %v269_v9 = vor.u32 %v268_v61, %v264_v51  ;;  %v1252_v10 = vrot.slane %v1250_v63, 4  ;;  %v1263_v11 = vshrl.u32 %v3913_v54, 16 }
  0x26   : > { %v1269_v12 = vshll.u32 %v3921_v59, 16  ;;  %3451 = vmatprep.mubr.msk.bf16.mxu0 %vm453_vm3, %v3046_v0  ;;  %v265_v16 = vsel %vm3892_vm2, %v260_v1, %v264_v51  ;;  %v1255_v17 = vrot.slane %v1253_v7, 5  ;;  %v1628_v19 = vrot.slane %v3913_v54, 5  ;;  %v3966_v51 = vld [vmem:[%s3860_s5 + $0x2c] sm:$0x1] }
  0x27   : > { %v1261_v18 = vrot.slane %v1259_v8, 5  ;;  %v270_v21 = vrot.slane %v269_v9, 4  ;;  %v1265_v22 = vrot.slane %v1263_v11, 4  ;;  %v1631_v24 = vrot.slane %v3921_v59, 5  ;;  %v3976_v8 = vld [vmem:[%s3860_s5 + $0x28] sm:$0xf] }
  0x28   : > { %v1271_v23 = vrot.slane %v1269_v12, 5  ;;  %v1256_v25 = vor.u32 %v1255_v17, %v1252_v10  ;;  %v3941_v26 = vrot.slane %v1628_v19, 4  ;;  %v277_v30 = vshrl.u32 %v3929_v15, 16 }
  0x29   : > { %v280_v31 = vshll.u32 %v3929_v15, 16  ;;  %v275_v33 = vsel %vm3892_vm2, %v270_v21, %v274_v62  ;;  %v1266_v34 = vor.u32 %v1265_v22, %v1261_v18  ;;  %v286_v35 = vshll.u32 %v3936_v20, 16  ;;  %v3973_v62 = vld [vmem:[%s3860_s5 + $0x24] sm:$0xf] }
  0x2a   : > { %v290_v36 = vshrl.u32 %v3936_v20, 16  ;;  %v2923_v39 = vcombine.low %v265_v16, %v275_v33  ;;  %v1257_v40 = vrot.slane %v1256_v25, 4  ;;  %v279_v41 = vrot.slane %v277_v30, 4  ;;  %v3029_v33 = vld [vmem:[%s3860_s5 + $0x30] sm:$0xf] }
  0x2b   : > { %v282_v42 = vrot.slane %v280_v31, 5  ;;  %v1267_v45 = vrot.slane %v1266_v34, 4  ;;  %v288_v46 = vrot.slane %v286_v35, 5  ;;  %v296_v48 = vshll.u32 %v3944_v29, 16 }
  0x2c   : > { %v292_v47 = vrot.slane %v290_v36, 4  ;;  %3380 = vmatmul.mubr.msk.bf16.vlgmr.msra.gmra.mrb[0].mxu1 %vm453_vm3, %v2923_v39  ;;  %v1262_v49 = vsel %vm3892_vm2, %v1257_v40, %v1261_v18  ;;  %v1274_v52 = vshrl.u32 %v3026_v37, 16  ;;  %v1277_v53 = vshll.u32 %v3026_v37, 16  ;;  %v3990_v18 = vld [vmem:[%s3860_s5 + $0x2c] sm:$0x1] }
  0x2d   : > { %v283_v50 = vor.u32 %v282_v42, %v279_v41  ;;  %3396 = vmatpush3.bf16.msra.mxu1 %v3849_v2  ;;  %v1272_v55 = vsel %vm3892_vm2, %v1267_v45, %v1271_v23  ;;  %v298_v60 = vrot.slane %v296_v48, 5  ;;  %v1283_v61 = vshll.u32 %v3954_v43, 16  ;;  %v3981_v2 = vld [vmem:[%s4732_s1 + $0x30] sm:$0xff]  }
  0x2e   : > { %v293_v58 = vor.u32 %v292_v47, %v288_v46  ;;  %v3047_v63 = vcombine.low %v1262_v49, %v1272_v55  ;;  %v1276_v1 = vrot.slane %v1274_v52, 4  ;;  %v1279_v7 = vrot.slane %v1277_v53, 5  ;;  %3413 = vmatprep.subr.bf16.mxu1 %v3959_v44  ;;  %v4000_v39 = vld [vmem:[%s3860_s5 + $0x34] sm:$0xf]  ;;  %v4009_v47 = vld [vmem:[%s3860_s5 + $0x38] sm:$0x1] }
  0x2f   : > { %v284_v0 = vrot.slane %v283_v50, 4  ;;  %v1285_v10 = vrot.slane %v1283_v61, 5  ;;  %v1287_v11 = vshrl.u32 %v3954_v43, 16  ;;  %v1293_v12 = vshll.u32 %v3966_v51, 16 }
  0x30   : > { %v294_v9 = vrot.slane %v293_v58, 4  ;;  %3452 = vmatmul.mubr.msk.bf16.vlgmr.msra.gmra.mrb[0].mxu0 %vm453_vm3, %v3047_v63  ;;  %v1280_v17 = vor.u32 %v1279_v7, %v1276_v1  ;;  %v301_v21 = vshrl.u32 %v3973_v62, 16  ;;  %v304_v22 = vshll.u32 %v3973_v62, 16 }
  0x31   : > { %v289_v16 = vsel %vm3892_vm2, %v284_v0, %v288_v46  ;;  %3468 = vmatpush3.bf16.msra.mxu0 %v3854_v3  ;;  %v1289_v25 = vrot.slane %v1287_v11, 4  ;;  %v1295_v30 = vrot.slane %v1293_v12, 5  ;;  %v310_v31 = vshll.u32 %v3976_v8, 16  ;;  %v4014_v0 = vld [vmem:[%s3860_s5 + $0x30] sm:$0xf] }
  0x32   : > { %v299_v23 = vsel %vm3892_vm2, %v294_v9, %v298_v60  ;;  %v1281_v35 = vrot.slane %v1280_v17, 4  ;;  %v303_v36 = vrot.slane %v301_v21, 4  ;;  %v306_v37 = vrot.slane %v304_v22, 5  ;;  %3485 = vmatprep.subr.bf16.mxu0 %v3981_v2  ;;  %v4020_v11 = vld [vmem:[%s3860_s5 + $0x34] sm:$0xf] }
  0x33   : > { %v2924_v34 = vcombine.low %v289_v16, %v299_v23  ;;  %v1290_v3 = vor.u32 %v1289_v25, %v1285_v10  ;;  %v312_v40 = vrot.slane %v310_v31, 5  ;;  %v314_v41 = vshrl.u32 %v3976_v8, 16  ;;  %v4025_v22 = vld [vmem:[%s3860_s5 + $0x38] sm:$0x1] }
  0x34   : > { %v320_v42 = vshll.u32 %v3990_v18, 16  ;;  %v1286_v45 = vsel %vm3892_vm2, %v1281_v35, %v1285_v10  ;;  %v307_v46 = vor.u32 %v306_v37, %v303_v36  ;;  %v1298_v48 = vshrl.u32 %v3029_v33, 16  ;;  %v3063_v37 = vld [vmem:[%s3860_s5 + $0xc] sm:$0xe] }
  0x35   : > { %3383 = vmatprep.mubr.msk.bf16.mxu1 %vm453_vm3, %v2924_v34  ;;  %v1301_v49 = vshll.u32 %v3029_v33, 16  ;;  %v1291_v50 = vrot.slane %v1290_v3, 4  ;;  %v316_v52 = vrot.slane %v314_v41, 4  ;;  %v1307_v55 = vshll.u32 %v4000_v39, 16 }
  0x36   : > { %v322_v53 = vrot.slane %v320_v42, 5  ;;  %v308_v58 = vrot.slane %v307_v46, 4  ;;  %v1300_v60 = vrot.slane %v1298_v48, 4  ;;  %v1311_v63 = vshrl.u32 %v4000_v39, 16 }
  0x37   : > { %v1303_v61 = vrot.slane %v1301_v49, 5  ;;  %v1296_v1 = vsel %vm3892_vm2, %v1291_v50, %v1295_v30  ;;  %v317_v7 = vor.u32 %v316_v52, %v312_v40  ;;  %v1309_v9 = vrot.slane %v1307_v55, 5 }
  0x38   : > { %v1317_v10 = vshll.u32 %v4009_v47, 16  ;;  %v3048_v12 = vcombine.low %v1286_v45, %v1296_v1  ;;  %v313_v16 = vsel %vm3892_vm2, %v308_v58, %v312_v40  ;;  %v1313_v21 = vrot.slane %v1311_v63, 4  ;;  %v4037_v45 = vld [vmem:[%s3860_s5 + $0x3c] sm:$0xf]  ;;  %v4051_v63 = vld [vmem:[%s3860_s5 + $0x44] sm:$0x1] }
  0x39   : > { %v1304_v17 = vor.u32 %v1303_v61, %v1300_v60  ;;  %v318_v23 = vrot.slane %v317_v7, 4  ;;  %v325_v30 = vshrl.u32 %v4014_v0, 16  ;;  %v328_v31 = vshll.u32 %v4014_v0, 16  ;;  %v3064_v1 = vld [vmem:[%s3860_s5 + $0x18] sm:$0xe] }
  0x3a   : > { %v1319_v25 = vrot.slane %v1317_v10, 5  ;;  %3455 = vmatprep.mubr.msk.bf16.mxu0 %vm453_vm3, %v3048_v12  ;;  %v1314_v34 = vor.u32 %v1313_v21, %v1309_v9  ;;  %v334_v35 = vshll.u32 %v4020_v11, 16  ;;  %v338_v36 = vshrl.u32 %v4020_v11, 16 }
  0x3b   : > { %v1305_v33 = vrot.slane %v1304_v17, 4  ;;  %v323_v3 = vsel %vm3892_vm2, %v318_v23, %v322_v53  ;;  %v327_v40 = vrot.slane %v325_v30, 4  ;;  %v330_v41 = vrot.slane %v328_v31, 5  ;;  %v4048_v53 = vld [vmem:[%s3860_s5 + $0x40] sm:$0xf] }
  0x3c   : > { %v344_v42 = vshll.u32 %v4025_v22, 16  ;;  %v2925_v46 = vcombine.low %v313_v16, %v323_v3  ;;  %v1315_v49 = vrot.slane %v1314_v34, 4  ;;  %v336_v50 = vrot.slane %v334_v35, 5  ;;  %v4062_v16 = vld [vmem:[%s3860_s5 + $0x48] sm:$0xf] }
  0x3d   : > { %v1310_v48 = vsel %vm3892_vm2, %v1305_v33, %v1309_v9  ;;  %v331_v55 = vor.u32 %v330_v41, %v327_v40  ;;  %v340_v58 = vrot.slane %v338_v36, 4  ;;  %v3071_v61 = vrot.slane %v3063_v37, 9 }
  0x3e   : > { %v346_v60 = vrot.slane %v344_v42, 5  ;;  %3384 = vmatmul.mubr.msk.bf16.gmra.mrb[4].mxu1 %vm453_vm3, %v2925_v46  ;;  %v1320_v7 = vsel %vm3892_vm2, %v1315_v49, %v1319_v25  ;;  %v1623_v9 = vrot.slane %v1621_v56, 4  ;;  %v349_v10 = vshrl.u32 %v4037_v45, 16 }
  0x3f   : > { %v352_v12 = vshll.u32 %v4037_v45, 16  ;;  %v3049_v17 = vcombine.low %v1310_v48, %v1320_v7  ;;  %v332_v21 = vrot.slane %v331_v55, 4  ;;  %v341_v23 = vor.u32 %v340_v58, %v336_v50 }
  0x40   : > { %v1622_v30 = vsel %vm4043_vm6, %v3071_v61, %v1621_v56  ;;  %v1625_v25 = vsel %vm4043_vm6, %v1623_v9, %v1624_v57  ;;  %v351_v31 = vrot.slane %v349_v10, 4  ;;  %v358_v34 = vshll.u32 %v4048_v53, 16  ;;  %v4078_v56 = vld [vmem:[%s3860_s5 + $0x4c] sm:$0xf]  ;;  %v4100_v10 = vld [vmem:[%s3860_s5 + $0x54] sm:$0xf] }
  0x41   : > { %v354_v33 = vrot.slane %v352_v12, 5  ;;  %3456 = vmatmul.mubr.msk.bf16.gmra.mrb[4].mxu0 %vm453_vm3, %v3049_v17  ;;  %v337_v35 = vsel %vm3892_vm2, %v332_v21, %v336_v50  ;;  %v342_v36 = vrot.slane %v341_v23, 4  ;;  %v3081_v13 = vcombine.low %v1622_v30, %v1625_v25  ;;  %v3065_v50 = vld [vmem:[%s3860_s5 + $0x24] sm:$0xe]  ;;  %v4114_v17 = vld [vmem:[%s4732_s1 + $0x38] sm:$0xff]  }
  0x42   : > { %v362_v37 = vshrl.u32 %v4048_v53, 16  ;;  %v360_v57 = vrot.slane %v358_v34, 5  ;;  %v368_v40 = vshll.u32 %v4051_v63, 16  ;;  %v3072_v41 = vrot.slane %v3064_v1, 9 }
  0x43   : > { %v355_v3 = vor.u32 %v354_v33, %v351_v31  ;;  %v347_v42 = vsel %vm3892_vm2, %v342_v36, %v346_v60  ;;  %3469 = vmatprep.mubr.msk.bf16.mxu0 %vm453_vm3, %v3081_v13  ;;  %v1632_v48 = vsel %vm4043_vm6, %v3941_v26, %v1631_v24  ;;  %v373_v49 = vshrl.u32 %v4062_v16, 16  ;;  %v4119_v36 = vld [vmem:[%s3860_s5 + $0x5c] sm:$0x1] }
  0x44   : > { %v364_v46 = vrot.slane %v362_v37, 4  ;;  %v2926_v55 = vcombine.low %v337_v35, %v347_v42  ;;  %v370_v61 = vrot.slane %v368_v40, 5  ;;  %v1629_v60 = vsel %vm4043_vm6, %v3072_v41, %v1628_v19  ;;  %v4109_v19 = vld [vmem:[%s3860_s5 + $0x58] sm:$0xf]  ;;  %v3066_v42 = vld [vmem:[%s3860_s5 + $0x30] sm:$0xe] }
  0x45   : > { %v356_v58 = vrot.slane %v355_v3, 4  ;;  %v3082_v7 = vcombine.low %v1629_v60, %v1632_v48  ;;  %v375_v9 = vrot.slane %v373_v49, 4  ;;  %v376_v59 = vshll.u32 %v4062_v16, 16 }
  0x46   : > { %v365_v1 = vor.u32 %v364_v46, %v360_v57  ;;  %3387 = vmatprep.mubr.msk.bf16.mxu1 %vm453_vm3, %v2926_v55  ;;  %v382_v26 = vshll.u32 %v4078_v56, 16  ;;  %v386_v54 = vshrl.u32 %v4078_v56, 16  ;;  %v392_v12 = vshll.u32 %v4081_v14, 16 }
  0x47   : > { %v361_v24 = vsel %vm3892_vm2, %v356_v58, %v360_v57  ;;  %v378_v23 = vrot.slane %v376_v59, 5  ;;  %v3073_v30 = vrot.slane %v3065_v50, 9  ;;  %v1635_v25 = vrot.slane %v3954_v43, 5  ;;  %v3067_v59 = vld [vmem:[%s3860_s5 + $0x3c] sm:$0xe] }
  0x48   : > { %v366_v21 = vrot.slane %v365_v1, 4  ;;  %v384_v31 = vrot.slane %v382_v26, 5  ;;  %v388_v33 = vrot.slane %v386_v54, 4  ;;  %v394_v34 = vrot.slane %v392_v12, 5 }
  0x49   : > { %v1638_v35 = vrot.slane %v3966_v51, 5  ;;  %3470 = vmatmul.mubr.msk.bf16.vlgmr.msra.gmra.mrb[0].mxu0 %vm453_vm3, %v3082_v7  ;;  %v379_v37 = vor.u32 %v378_v23, %v375_v9  ;;  %v1636_v3 = vsel %vm4043_vm6, %v3073_v30, %v1635_v25  ;;  %v1637_v57 = vrot.slane %v1635_v25, 4  ;;  %v4148_v23 = vld [vmem:[%s3860_s5 + $0x44] sm:$0x1] }
  0x4a   : > { %v371_v13 = vsel %vm3892_vm2, %v366_v21, %v370_v61  ;;  %3486 = vmatpush3.bf16.msra.mxu0 %v3981_v2  ;;  %v389_v43 = vor.u32 %v388_v33, %v384_v31  ;;  %v397_v41 = vshrl.u32 %v4100_v10, 16  ;;  %v400_v51 = vshll.u32 %v4100_v10, 16  ;;  %v4145_v21 = vld [vmem:[%s3860_s5 + $0x40] sm:$0xf] }
  0x4b   : > { %v2927_v40 = vcombine.low %v361_v24, %v371_v13  ;;  %v380_v46 = vrot.slane %v379_v37, 4  ;;  %v1639_v48 = vsel %vm4043_vm6, %v1637_v57, %v1638_v35  ;;  %v406_v49 = vshll.u32 %v4109_v19, 16  ;;  %3503 = vmatprep.subr.bf16.mxu0 %v4114_v17 }
  0x4c   : > { %v410_v50 = vshrl.u32 %v4109_v19, 16  ;;  %v390_v2 = vrot.slane %v389_v43, 4  ;;  %v3083_v55 = vcombine.low %v1636_v3, %v1639_v48  ;;  %v399_v58 = vrot.slane %v397_v41, 4  ;;  %v4163_v41 = vld [vmem:[%s3860_s5 + $0x4c] sm:$0xf] }
  0x4d   : > { %3388 = vmatmul.mubr.msk.bf16.gmra.mrb[8].mxu1 %vm453_vm3, %v2927_v40  ;;  %v402_v61 = vrot.slane %v400_v51, 5  ;;  %v385_v60 = vsel %vm3892_vm2, %v380_v46, %v384_v31  ;;  %v408_v1 = vrot.slane %v406_v49, 5  ;;  %v416_v9 = vshll.u32 %v4119_v36, 16  ;;  %v4166_v51 = vld [vmem:[%s3860_s5 + $0x50] sm:$0x1] }
  0x4e   : > { %v412_v7 = vrot.slane %v410_v50, 4  ;;  %v395_v24 = vsel %vm3892_vm2, %v390_v2, %v394_v34  ;;  %3473 = vmatprep.mubr.msk.bf16.mxu0 %vm453_vm3, %v3083_v55  ;;  %v3074_v54 = vrot.slane %v3066_v42, 9  ;;  %v1642_v12 = vrot.slane %v4000_v39, 5  ;;  %v3068_v42 = vld [vmem:[%s3860_s5 + $0x48] sm:$0xe] }
  0x4f   : > { %v403_v26 = vor.u32 %v402_v61, %v399_v58  ;;  %v2928_v30 = vcombine.low %v385_v60, %v395_v24  ;;  %v418_v31 = vrot.slane %v416_v9, 5  ;;  %v1645_v33 = vrot.slane %v4009_v47, 5  ;;  %v4174_v55 = vld [vmem:[%s3860_s5 + $0x58] sm:$0xf]  ;;  %v4190_v24 = vld [vmem:[%s3860_s5 + $0x68] sm:$0x1] }
  0x50   : > { %v413_v25 = vor.u32 %v412_v7, %v408_v1  ;;  %v1643_v34 = vsel %vm4043_vm6, %v3074_v54, %v1642_v12  ;;  %v1644_v13 = vrot.slane %v1642_v12, 4  ;;  %v3075_v37 = vrot.slane %v3067_v59, 9  ;;  %v4183_v7 = vld [vmem:[%s3860_s5 + $0x5c] sm:$0x1]  ;;  %v4187_v59 = vld [vmem:[%s3860_s5 + $0x64] sm:$0xf] }
  0x51   : > { %v404_v35 = vrot.slane %v403_v26, 4  ;;  %3391 = vmatprep.mubr.msk.bf16.mxu1 %vm453_vm3, %v2928_v30  ;;  %v1649_v3 = vrot.slane %v4145_v21, 5  ;;  %v1652_v57 = vrot.slane %v4148_v23, 5  ;;  %v2939_v43 = vcombine.low %v3864_v4, %v3867_v5  ;;  %v3069_v4 = vld [vmem:[%s3860_s5 + $0x54] sm:$0xe]  ;;  %4744 = vst [vmem:[#allocation2_spill] sm:$0xff] %v4183_v7 }
  0x52   : > { %v414_v39 = vrot.slane %v413_v25, 4  ;;  %v1646_v47 = vsel %vm4043_vm6, %v1644_v13, %v1645_v33  ;;  %v3076_v61 = vrot.slane %v3068_v42, 9  ;;  %v1656_v60 = vrot.slane %v4163_v41, 5  ;;  %4745 = vst [vmem:[#allocation3_spill] sm:$0xff] %v4187_v59  ;;  %4746 = vst [vmem:[#allocation4_spill] sm:$0xff] %v4190_v24 }
  0x53   : > { %v409_v40 = vsel %vm3892_vm2, %v404_v35, %v408_v1  ;;  %v3084_v48 = vcombine.low %v1643_v34, %v1646_v47  ;;  %v1650_v49 = vsel %vm4043_vm6, %v3075_v37, %v1649_v3  ;;  %v1651_v50 = vrot.slane %v1649_v3, 4  ;;  %v3070_v25 = vld [vmem:[%s3860_s5 + $0x60] sm:$0xe]  ;;  %v743_v47 = vld [vmem:[%s3860_s5 + $0xc] sm:$0xe] }
  0x54   : > { %v419_v46 = vsel %vm3892_vm2, %v414_v39, %v418_v31  ;;  %v1659_v1 = vrot.slane %v4166_v51, 5  ;;  %v1657_v26 = vsel %vm4043_vm6, %v3076_v61, %v1656_v60  ;;  %v1658_v54 = vrot.slane %v1656_v60, 4  ;;  %v746_v60 = vld [vmem:[%s3860_s5 + $0x30] sm:$0xe] }
  0x55   : > { %v2929_v2 = vcombine.low %v409_v40, %v419_v46  ;;  %3474 = vmatmul.mubr.msk.bf16.gmra.mrb[4].mxu0 %vm453_vm3, %v3084_v48  ;;  %v1653_v58 = vsel %vm4043_vm6, %v1651_v50, %v1652_v57  ;;  %v3077_v12 = vrot.slane %v3069_v4, 9  ;;  %v1663_v30 = vrot.slane %v4174_v55, 5 }
  0x56   : > { %v3085_v9 = vcombine.low %v1650_v49, %v1653_v58  ;;  %v778_v31 = vrot.slane %v3897_v32, 5  ;;  %v1666_v33 = vrot.slane %v4183_v7, 5  ;;  %v1660_v35 = vsel %vm4043_vm6, %v1658_v54, %v1659_v1  ;;  %v4491_v7 = vld [vmem:[%s3860_s5 + $0x70] sm:$0xf] }
  0x57   : > { %3392 = vmatmul.mubr.msk.bf16.gmra.mrb[12].mxu1 %vm453_vm3, %v2929_v2  ;;  %v1664_v34 = vsel %vm4043_vm6, %v3077_v12, %v1663_v30  ;;  %v1665_v13 = vrot.slane %v1663_v30, 4  ;;  %v1670_v37 = vrot.slane %v4187_v59, 5  ;;  %v2940_v39 = vcombine.low %v3888_v27, %v3897_v32  ;;  %v4218_v27 = vld [vmem:[%s4732_s1 + $0x18] sm:$0xff]   ;;  %v745_v32 = vld [vmem:[%s3860_s5 + $0x24] sm:$0xe] }
  0x58   : > { %3397 = vmatprep.mubr.msk.bf16.mxu1 %vm453_vm3, %v2939_v43  ;;  %3477 = vmatprep.mubr.msk.bf16.mxu0 %vm453_vm3, %v3085_v9  ;;  %v3086_v3 = vcombine.low %v1657_v26, %v1660_v35  ;;  %v3078_v57 = vrot.slane %v3070_v25, 9  ;;  %v1673_v40 = vrot.slane %v4190_v24, 5  ;;  %v744_v43 = vld [vmem:[%s3860_s5 + $0x18] sm:$0xe]  ;;  %v781_v42 = vrot.slane %v3900_v38, 5 }
  0x59   : > { %v2941_v46 = vcombine.low %v3929_v15, %v3936_v20  ;;  %v1667_v48 = vsel %vm4043_vm6, %v1665_v13, %v1666_v33  ;;  %v1672_v49 = vrot.slane %v1670_v37, 4  ;;  %v2957_v2 = vrot.slane %v743_v47, 9  ;;  %v3721_v35 = vld [vmem:[%s3860_s5 + $0x18] sm:$0xff]   ;;  %v3156_v24 = vld [vmem:[%s3860_s5 + $0x6c] sm:$0xf] }
  0x5a   : > { %v3087_v50 = vcombine.low %v1664_v34, %v1667_v48  ;;  %v780_v4 = vrot.slane %v778_v31, 4  ;;  %v2958_v38 = vrot.slane %v744_v43, 9  ;;  %v1671_v15 = vsel %vm4043_vm6, %v3078_v57, %v1670_v37  ;;  %v3153_v48 = vld [vmem:[%s3860_s5 + $0x60] sm:$0xf] }
  0x5b   : > { %v1674_v58 = vsel %vm4043_vm6, %v1672_v49, %v1673_v40  ;;  %v785_v61 = vrot.slane %v3936_v20, 5  ;;  %v4234_v1 = vsel %vm4043_vm6, %v2957_v2, %v778_v31  ;;  %v788_v26 = vrot.slane %v3944_v29, 5  ;;  %v3724_v49 = vld [vmem:[%s3860_s5 + $0x24] sm:$0xff]  }
  0x5c   : > { %v4238_v9 = vsel %vm4043_vm6, %v780_v4, %v781_v42  ;;  %v2959_v54 = vrot.slane %v745_v32, 9  ;;  %v3088_v30 = vcombine.low %v1671_v15, %v1674_v58  ;;  %v792_v25 = vrot.slane %v3976_v8, 5  ;;  %v3135_v42 = vld [vmem:[%s3860_s5 + $0x18] sm:$0xf] }
  0x5d   : > { %3478 = vmatmul.mubr.msk.bf16.gmra.mrb[8].mxu0 %vm453_vm3, %v3086_v3  ;;  %v2967_v20 = vcombine.low %v4234_v1, %v4238_v9  ;;  %v787_v12 = vrot.slane %v785_v61, 4  ;;  %v795_v31 = vrot.slane %v3990_v18, 5  ;;  %v2960_v33 = vrot.slane %v746_v60, 9 }
  0x5e   : > { %3481 = vmatprep.mubr.msk.bf16.mxu0 %vm453_vm3, %v3087_v50  ;;  %v2942_v29 = vcombine.low %v3973_v62, %v3976_v8  ;;  %v799_v13 = vrot.slane %v4020_v11, 5  ;;  %v802_v37 = vrot.slane %v4025_v22, 5  ;;  %v4265_v3 = vsel %vm4043_vm6, %v2959_v54, %v792_v25  ;;  %v747_v8 = vld [vmem:[%s3860_s5 + $0x3c] sm:$0xe] }
  0x5f   : > { %3398 = vmatmul.mubr.msk.bf16.vlgmr.msra.gmra.mrb[0].mxu1 %vm453_vm3, %v2940_v39  ;;  %v4255_v34 = vsel %vm4043_vm6, %v787_v12, %v788_v26  ;;  %v2943_v39 = vcombine.low %v4014_v0, %v4020_v11  ;;  %v794_v62 = vrot.slane %v792_v25, 4  ;;  %v771_v57 = vrot.slane %v3867_v5, 5  ;;  %v742_v0 = vld [vmem:[%s3860_s5] sm:$0xe]  ;;  %v4463_v5 = vld [vmem:[%s3860_s5 + $0x64] sm:$0xf] }
  0x60   : > { %3414 = vmatpush3.bf16.msra.mxu1 %v3959_v44  ;;  %3401 = vmatprep.mubr.msk.bf16.mxu1 %vm453_vm3, %v2941_v46  ;;  %v4246_v44 = vsel %vm4043_vm6, %v2958_v38, %v785_v61  ;;  %v4271_v22 = vsel %vm4043_vm6, %v2960_v33, %v799_v13  ;;  %v801_v40 = vrot.slane %v799_v13, 4  ;;  %v774_v47 = vrot.slane %v3870_v6, 5  ;;  %v4293_v6 = vld [vmem:[%s3860_s5 + $0x1c] sm:$0xf]  ;;  %v748_v61 = vld [vmem:[%s3860_s5 + $0x48] sm:$0xe] }
  0x61   : > { %3431 = vmatprep.subr.bf16.mxu1 %v4218_v27  ;;  %v2968_v18 = vcombine.low %v4246_v44, %v4255_v34  ;;  %v4277_v11 = vsel %vm4043_vm6, %v794_v62, %v795_v31  ;;  %v2961_v46 = vrot.slane %v747_v8, 9  ;;  %v2956_v50 = vrot.slane %v742_v0, 9  ;;  %v4317_v25 = vld [vmem:[%s4732_s1 + $0x40] sm:$0xff]   ;;  %4747 = vst [vmem:[#allocation5_spill] sm:$0xff] %v4463_v5 }
  0x62   : > { %v4286_v43 = vsel %vm4043_vm6, %v801_v40, %v802_v37  ;;  %v773_v32 = vrot.slane %v771_v57, 4  ;;  %v806_v2 = vrot.slane %v4048_v53, 5  ;;  %v809_v4 = vrot.slane %v4051_v63, 5  ;;  %v3726_v63 = vld [vmem:[%s3860_s5 + $0x30] sm:$0xff]   ;;  %v3138_v8 = vld [vmem:[%s3860_s5 + $0x24] sm:$0xf] }
  0x63   : > { %v2944_v38 = vcombine.low %v4037_v45, %v4048_v53  ;;  %v2076_v15 = vshrl.u32 %v3135_v42, 16  ;;  %v2079_v58 = vshll.u32 %v3135_v42, 16  ;;  %v2085_v60 = vshll.u32 %v4293_v6, 16  ;;  %v4441_v44 = vld [vmem:[%s3860_s5 + $0x44] sm:$0x1] }
  0x64   : > { %v2089_v26 = vshrl.u32 %v4293_v6, 16  ;;  %v4305_v54 = vsel %vm4043_vm6, %v2961_v46, %v806_v2  ;;  %v808_v12 = vrot.slane %v806_v2, 4  ;;  %v772_v45 = vsel %vm4043_vm6, %v2956_v50, %v771_v57  ;;  %v749_v46 = vld [vmem:[%s3860_s5 + $0x54] sm:$0xe] }
  0x65   : > { %3482 = vmatmul.mubr.msk.bf16.gmra.mrb[12].mxu0 %vm453_vm3, %v3088_v30  ;;  %v2945_v30 = vcombine.low %v4062_v16, %v4078_v56  ;;  %v775_v53 = vsel %vm4043_vm6, %v773_v32, %v774_v47  ;;  %v2962_v33 = vrot.slane %v748_v61, 9  ;;  %v4325_v16 = vld [vmem:[%s3860_s5 + $0x20] sm:$0x1]  ;;  %v813_v37 = vrot.slane %v4078_v56, 5  ;;  %v4339_v56 = vld [vmem:[%s3860_s5 + $0x28] sm:$0xf] }
  0x66   : > { %3487 = vmatprep.mubr.msk.bf16.mxu0 %vm453_vm3, %v3721_v35  ;;  %v4321_v31 = vsel %vm4043_vm6, %v808_v12, %v809_v4  ;;  %v2081_v35 = vrot.slane %v2079_v58, 5  ;;  %v2091_v62 = vrot.slane %v2089_v26, 4  ;;  %v816_v57 = vrot.slane %v4081_v14, 5  ;;  %v3141_v14 = vld [vmem:[%s3860_s5 + $0x30] sm:$0xf] }
  0x67   : > { %3402 = vmatmul.mubr.msk.bf16.gmra.mrb[4].mxu1 %vm453_vm3, %v2942_v29  ;;  %v2078_v29 = vrot.slane %v2076_v15, 4  ;;  %v4343_v40 = vsel %vm4043_vm6, %v2962_v33, %v813_v37  ;;  %v2946_v0 = vcombine.low %v4100_v10, %v4109_v19  ;;  %v2966_v47 = vcombine.low %v772_v45, %v775_v53  ;;  %v3730_v15 = vld [vmem:[%s3860_s5 + $0x48] sm:$0xff]  }
  0x68   : > { %3405 = vmatprep.mubr.msk.bf16.mxu1 %vm453_vm3, %v2943_v39  ;;  %v4332_v39 = vrot.slane %v2085_v60, 5  ;;  %v2095_v42 = vshll.u32 %v4325_v16, 16  ;;  %v2100_v32 = vshrl.u32 %v3138_v8, 16  ;;  %v2103_v2 = vshll.u32 %v3138_v8, 16 }
  0x69   : > { %v2082_v50 = vor.u32 %v2081_v35, %v2078_v29  ;;  %v2109_v58 = vshll.u32 %v4339_v56, 16  ;;  %v2113_v61 = vshrl.u32 %v4339_v56, 16  ;;  %v2124_v26 = vshrl.u32 %v3141_v14, 16 }
  0x6a   : > { %v2092_v10 = vor.u32 %v2091_v62, %v4332_v39  ;;  %v2127_v12 = vshll.u32 %v3141_v14, 16  ;;  %v823_v33 = vrot.slane %v4119_v36, 5  ;;  %v2097_v35 = vrot.slane %v2095_v42, 5 }
  0x6b   : > { %v2083_v29 = vrot.slane %v2082_v50, 4  ;;  %v2102_v8 = vrot.slane %v2100_v32, 4  ;;  %v2105_v36 = vrot.slane %v2103_v2, 5  ;;  %v2115_v42 = vrot.slane %v2113_v61, 4 }
  0x6c   : > { %v2126_v14 = vrot.slane %v2124_v26, 4 }
  0x6d   : > { %3488 = vmatmul.mubr.msk.bf16.vlgmr.msra.gmra.mrb[0].mxu0 %vm453_vm3, %v3724_v49  ;;  %v3728_v49 = vld [vmem:[%s3860_s5 + $0x3c] sm:$0xff]   ;;  %v2088_v61 = vsel %vm3892_vm2, %v2083_v29, %v4332_v39 }
  0x6e   : > { %3504 = vmatpush3.bf16.msra.mxu0 %v4114_v17  ;;  %3491 = vmatprep.mubr.msk.bf16.mxu0 %vm453_vm3, %v3726_v63  ;;  %v815_v17 = vrot.slane %v813_v37, 4  ;;  %v820_v63 = vrot.slane %v4109_v19, 5  ;;  %v2093_v19 = vrot.slane %v2092_v10, 4  ;;  %v4396_v10 = vld [vmem:[%s3860_s5 + $0x40] sm:$0xf] }
  0x6f   : > { %3406 = vmatmul.mubr.msk.bf16.gmra.mrb[8].mxu1 %vm453_vm3, %v2944_v38  ;;  %3521 = vmatprep.subr.bf16.mxu0 %v4317_v25  ;;  %v4357_v38 = vld [vmem:[%s3860_s5 + $0x34] sm:$0xf]  ;;  %v2157_v39 = vshll.u32 %v4396_v10, 16  ;;  %v2161_v29 = vshrl.u32 %v4396_v10, 16 }
  0x70   : > { %3409 = vmatprep.mubr.msk.bf16.mxu1 %vm453_vm3, %v2945_v30  ;;  %v4354_v4 = vsel %vm4043_vm6, %v815_v17, %v816_v57  ;;  %v2963_v30 = vrot.slane %v749_v46, 9  ;;  %v2133_v45 = vshll.u32 %v4357_v38, 16  ;;  %v2137_v53 = vshrl.u32 %v4357_v38, 16  ;;  %v4380_v17 = vld [vmem:[%s3860_s5 + $0x2c] sm:$0x1] }
  0x71   : > { %v822_v62 = vrot.slane %v820_v63, 4  ;;  %v4376_v57 = vrot.slane %v2109_v58, 5  ;;  %v3732_v58 = vld [vmem:[%s3860_s5 + $0x60] sm:$0xff]   ;;  %v2098_v26 = vsel %vm3892_vm2, %v2093_v19, %v2097_v35 }
  0x72   : > { %v4372_v37 = vsel %vm4043_vm6, %v2963_v30, %v820_v63  ;;  %v4389_v50 = vrot.slane %v2133_v45, 5  ;;  %v2139_v32 = vrot.slane %v2137_v53, 4  ;;  %v2119_v30 = vshll.u32 %v4380_v17, 16  ;;  %v3147_v63 = vld [vmem:[%s3860_s5 + $0x48] sm:$0xf] }
  0x73   : > { %v4384_v46 = vsel %vm4043_vm6, %v822_v62, %v823_v33  ;;  %v4407_v45 = vld [vmem:[%s3860_s5 + $0x4c] sm:$0xf]  ;;  %v2116_v53 = vor.u32 %v2115_v42, %v4376_v57  ;;  %v2172_v35 = vshrl.u32 %v3147_v63, 16  ;;  %v2175_v19 = vshll.u32 %v3147_v63, 16 }
  0x74   : > { %v2140_v60 = vor.u32 %v2139_v32, %v4389_v50  ;;  %v3150_v32 = vld [vmem:[%s3860_s5 + $0x54] sm:$0xf] }
  0x75   : > { %3492 = vmatmul.mubr.msk.bf16.gmra.mrb[4].mxu0 %vm453_vm3, %v3728_v49  ;;  %v4387_v49 = vld [vmem:[%s3860_s5 + $0x38] sm:$0x1]  ;;  %v2174_v34 = vrot.slane %v2172_v35, 4 }
  0x76   : > { %3495 = vmatprep.mubr.msk.bf16.mxu0 %vm453_vm3, %v3730_v15  ;;  %v3731_v15 = vld [vmem:[%s3860_s5 + $0x54] sm:$0xff]   ;;  %v2143_v62 = vshll.u32 %v4387_v49, 16 }
  0x77   : > { %3410 = vmatmul.mubr.msk.bf16.gmra.mrb[12].mxu1 %vm453_vm3, %v2946_v0  ;;  %v2129_v0 = vrot.slane %v2127_v12, 5  ;;  %v2106_v12 = vor.u32 %v2105_v36, %v2102_v8  ;;  %v2181_v8 = vshll.u32 %v4407_v45, 16  ;;  %v3161_v36 = vcombine.low %v2088_v61, %v2098_v26 }
  0x78   : > { %3415 = vmatprep.mubr.msk.bf16.mxu1 %vm453_vm3, %v2966_v47  ;;  %v3144_v47 = vld [vmem:[%s3860_s5 + $0x3c] sm:$0xf]  ;;  %v2145_v9 = vrot.slane %v2143_v62, 5  ;;  %v2141_v61 = vrot.slane %v2140_v60, 4  ;;  %v2196_v60 = vshrl.u32 %v3150_v32, 16 }
  0x79   : > { %v2130_v33 = vor.u32 %v2129_v0, %v2126_v14  ;;  %v2148_v2 = vshrl.u32 %v3144_v47, 16  ;;  %v2151_v13 = vshll.u32 %v3144_v47, 16  ;;  %v2107_v42 = vrot.slane %v2106_v12, 4 }
  0x7a   : > { %v2121_v14 = vrot.slane %v2119_v30, 5  ;;  %v2185_v0 = vshrl.u32 %v4407_v45, 16  ;;  %v2117_v47 = vrot.slane %v2116_v53, 4  ;;  %v4432_v12 = vrot.slane %v2157_v39, 5 }
  0x7b   : > { %v2131_v1 = vrot.slane %v2130_v33, 4  ;;  %v2153_v26 = vrot.slane %v2151_v13, 5  ;;  %v2163_v30 = vrot.slane %v2161_v29, 4  ;;  %v4446_v13 = vld [vmem:[%s3860_s5 + $0x50] sm:$0x1]  ;;  %v2199_v53 = vshll.u32 %v3150_v32, 16 }
  0x7c   : > { %v2187_v63 = vrot.slane %v2185_v0, 4  ;;  %v1355_v39 = vshll.u32 %v4163_v41, 16  ;;  %v2112_v29 = vsel %vm3892_vm2, %v2107_v42, %v4376_v57  ;;  %v2122_v35 = vsel %vm3892_vm2, %v2117_v47, %v2121_v14 }
  0x7d   : > { %3496 = vmatmul.mubr.msk.bf16.gmra.mrb[8].mxu0 %vm453_vm3, %v3731_v15  ;;  %v4429_v15 = vld [vmem:[%s3860_s5 + $0x58] sm:$0xf]  ;;  %v2164_v0 = vor.u32 %v2163_v30, %v4432_v12  ;;  %v2167_v32 = vshll.u32 %v4441_v44, 16  ;;  %v2146_v57 = vsel %vm3892_vm2, %v2141_v61, %v2145_v9  ;;  %v2191_v14 = vshll.u32 %v4446_v13, 16  ;;  %v4482_v61 = vld [vmem:[%s3860_s5 + $0x5c] sm:$0x1] }
  0x7e   : > { %3499 = vmatprep.mubr.msk.bf16.mxu0 %vm453_vm3, %v3732_v58  ;;  %v3733_v58 = vld [vmem:[%s3860_s5 + $0x6c] sm:$0xff]   ;;  %v2205_v33 = vshll.u32 %v4429_v15, 16  ;;  %v2209_v62 = vshrl.u32 %v4429_v15, 16  ;;  %v2198_v47 = vrot.slane %v2196_v60, 4  ;;  %v4749_v9 = vcombine.low %v4271_v22, %v4286_v43 }
  0x7f   : > { %3416 = vmatmul.mubr.msk.bf16.vlgmr.msra.gmra.mrb[0].mxu1 %vm453_vm3, %v2967_v20  ;;  %v2150_v20 = vrot.slane %v2148_v2, 4  ;;  %v4443_v2 = vrot.slane %v2181_v8, 5  ;;  %v2220_v30 = vshrl.u32 %v3153_v48, 16  ;;  %v2165_v60 = vrot.slane %v2164_v0, 4 }
  0x80   : > { %3432 = vmatpush3.bf16.msra.mxu1 %v4218_v27  ;;  %3419 = vmatprep.mubr.msk.bf16.mxu1 %vm453_vm3, %v2968_v18  ;;  %v4437_v27 = vld [vmem:[%s4732_s1 + $0x20] sm:$0xff]   ;;  %v2177_v18 = vrot.slane %v2175_v19, 5  ;;  %v2136_v19 = vsel %vm3892_vm2, %v2131_v1, %v4389_v50  ;;  %v4748_v50 = vcombine.low %v4265_v3, %v4277_v11  ;;  %v2223_v3 = vshll.u32 %v3153_v48, 16 }
  0x81   : > { %3539 = vmatprep.subr.bf16.mxu1 %v4437_v27  ;;  %v2154_v8 = vor.u32 %v2153_v26, %v2150_v20  ;;  %v2188_v1 = vor.u32 %v2187_v63, %v4443_v2  ;;  %v2201_v20 = vrot.slane %v2199_v53, 5  ;;  %v4475_v26 = vrot.slane %v2205_v33, 5 }
  0x82   : > { %v2178_v42 = vor.u32 %v2177_v18, %v2174_v34  ;;  %v2229_v11 = vshll.u32 %v4463_v5, 16  ;;  %v1359_v34 = vshrl.u32 %v4163_v41, 16  ;;  %v2169_v63 = vrot.slane %v2167_v32, 5  ;;  %v4503_v32 = vld [vmem:[%s3860_s5 + $0x68] sm:$0x1] }
  0x83   : > { %v2155_v18 = vrot.slane %v2154_v8, 4  ;;  %v3162_v53 = vcombine.low %v2112_v29, %v2122_v35  ;;  %v3163_v33 = vcombine.low %v2136_v19, %v2146_v57  ;;  %v2193_v43 = vrot.slane %v2191_v14, 5 }
  0x84   : > { %v2179_v22 = vrot.slane %v2178_v42, 4  ;;  %v2215_v48 = vshll.u32 %v4482_v61, 16  ;;  %v2222_v59 = vrot.slane %v2220_v30, 4  ;;  %v4493_v41 = vrot.slane %v2229_v11, 5 }
  0x85   : > { %3500 = vmatmul.mubr.msk.bf16.gmra.mrb[12].mxu0 %vm453_vm3, %v3733_v58  ;;  %v2211_v58 = vrot.slane %v2209_v62, 4  ;;  %v2189_v62 = vrot.slane %v2188_v1, 4  ;;  %v4495_v0 = vrot.slane %v1355_v39, 5  ;;  %v1361_v29 = vrot.slane %v1359_v34, 4 }
  0x86   : > { %3505 = vmatprep.mubr.msk.bf16.mxu0 %vm453_vm3, %v3161_v36  ;;  %v2233_v36 = vshrl.u32 %v4463_v5, 16  ;;  %v2225_v5 = vrot.slane %v2223_v3, 5  ;;  %v2160_v35 = vsel %vm3892_vm2, %v2155_v18, %v4432_v12  ;;  %v2170_v19 = vsel %vm3892_vm2, %v2165_v60, %v2169_v63  ;;  %v3735_v60 = vld [vmem:[%s3860_s5 + $0xc] sm:$0xff]  }
  0x87   : > { %3420 = vmatmul.mubr.msk.bf16.gmra.mrb[4].mxu1 %vm453_vm3, %v4748_v50  ;;  %v2202_v50 = vor.u32 %v2201_v20, %v2198_v47  ;;  %v2244_v57 = vshrl.u32 %v3156_v24, 16  ;;  %v2247_v42 = vshll.u32 %v3156_v24, 16  ;;  %v2253_v14 = vshll.u32 %v4491_v7, 16 }
  0x88   : > { %3423 = vmatprep.mubr.msk.bf16.mxu1 %vm453_vm3, %v4749_v9  ;;  %v2212_v9 = vor.u32 %v2211_v58, %v4475_v26  ;;  %v2235_v8 = vrot.slane %v2233_v36, 4  ;;  %v2257_v47 = vshrl.u32 %v4491_v7, 16  ;;  %v4750_v39 = vcombine.low %v4305_v54, %v4321_v31 }
  0x89   : > { %v2184_v12 = vsel %vm3892_vm2, %v2179_v22, %v4443_v2  ;;  %v2194_v1 = vsel %vm3892_vm2, %v2189_v62, %v2193_v43  ;;  %v2203_v20 = vrot.slane %v2202_v50, 4  ;;  %v2217_v24 = vrot.slane %v2215_v48, 5  ;;  %v3035_v50 = vld [vmem:[%s3860_s5 + $0x48] sm:$0xf] }
  0x8a   : > { %v4751_v58 = vcombine.low %v4343_v40, %v4354_v4  ;;  %v2213_v54 = vrot.slane %v2212_v9, 4  ;;  %v2236_v31 = vor.u32 %v2235_v8, %v4493_v41  ;;  %v2239_v2 = vshll.u32 %v4503_v32, 16  ;;  %v3178_v8 = vld [vmem:[%s3860_s5 + $0x18] sm:$0xe] }
  0x8b   : > { %v1362_v30 = vor.u32 %v1361_v29, %v4495_v0  ;;  %v1365_v3 = vshll.u32 %v4166_v51, 16  ;;  %v3164_v11 = vcombine.low %v2160_v35, %v2170_v19  ;;  %v2246_v36 = vrot.slane %v2244_v57, 4 }
  0x8c   : > { %v2249_v40 = vrot.slane %v2247_v42, 5  ;;  %v4527_v4 = vrot.slane %v2253_v14, 5  ;;  %v2259_v34 = vrot.slane %v2257_v47, 4  ;;  %v3165_v18 = vcombine.low %v2184_v12, %v2194_v1 }
  0x8d   : > { %3506 = vmatmul.mubr.msk.bf16.vlgmr.msra.gmra.mrb[0].mxu0 %vm453_vm3, %v3162_v53  ;;  %v2218_v63 = vsel %vm3892_vm2, %v2213_v54, %v2217_v24  ;;  %v2237_v53 = vrot.slane %v2236_v31, 4  ;;  %v1363_v22 = vrot.slane %v1362_v30, 4  ;;  %v1367_v43 = vrot.slane %v1365_v3, 5 }
  0x8e   : > { %3522 = vmatpush3.bf16.msra.mxu0 %v4317_v25  ;;  %3509 = vmatprep.mubr.msk.bf16.mxu0 %vm453_vm3, %v3163_v33  ;;  %v2226_v25 = vor.u32 %v2225_v5, %v2222_v59  ;;  %v2208_v59 = vsel %vm3892_vm2, %v2203_v20, %v4475_v26  ;;  %v4533_v5 = vld [vmem:[%s3860_s5 + $0x74] sm:$0x1]  ;;  %v2241_v33 = vrot.slane %v2239_v2, 5  ;;  %v2471_v62 = vrot.slane %v4293_v6, 5 }
  0x8f   : > { %3424 = vmatmul.mubr.msk.bf16.gmra.mrb[8].mxu1 %vm453_vm3, %v4750_v39  ;;  %v2250_v9 = vor.u32 %v2249_v40, %v2246_v36  ;;  %v2260_v48 = vor.u32 %v2259_v34, %v4527_v4  ;;  %v2263_v26 = vshll.u32 %v4533_v5, 16  ;;  %v4752_v29 = vcombine.low %v4372_v37, %v4384_v46  ;;  %v3180_v40 = vld [vmem:[%s3860_s5 + $0x30] sm:$0xe] }
  0x90   : > { %3427 = vmatprep.mubr.msk.bf16.mxu1 %vm453_vm3, %v4751_v58  ;;  %v2227_v51 = vrot.slane %v2226_v25, 4  ;;  %v3166_v35 = vcombine.low %v2208_v59, %v2218_v63  ;;  %v2242_v19 = vsel %vm3892_vm2, %v2237_v53, %v2241_v33  ;;  %v1346_v57 = vshrl.u32 %v3035_v50, 16  ;;  %v3032_v58 = vld [vmem:[%s3860_s5 + $0x3c] sm:$0xf]  ;;  %v3737_v25 = vld [vmem:[%s3860_s5 + $0x24] sm:$0xff]  }
  0x91   : > { %v1349_v42 = vshll.u32 %v3035_v50, 16  ;;  %v3186_v37 = vrot.slane %v3178_v8, 9  ;;  %v2473_v46 = vrot.slane %v2471_v62, 4  ;;  %v2474_v14 = vrot.slane %v4325_v16, 5  ;;  %v3179_v16 = vld [vmem:[%s3860_s5 + $0x24] sm:$0xe] }
  0x92   : > { %v2232_v6 = vsel %vm3892_vm2, %v2227_v51, %v4493_v41  ;;  %v1368_v47 = vsel %vm3892_vm2, %v1363_v22, %v1367_v43  ;;  %v2251_v39 = vrot.slane %v2250_v9, 4  ;;  %v2261_v12 = vrot.slane %v2260_v48, 4  ;;  %v3736_v41 = vld [vmem:[%s3860_s5 + $0x18] sm:$0xff]   ;;  %v3738_v50 = vld [vmem:[%s3860_s5 + $0x30] sm:$0xff]  }
  0x93   : > { %v2265_v1 = vrot.slane %v2263_v26, 5  ;;  %v1348_v20 = vrot.slane %v1346_v57, 4  ;;  %v3167_v24 = vcombine.low %v2232_v6, %v2242_v19  ;;  %v1351_v54 = vrot.slane %v1349_v42, 5  ;;  %v3739_v8 = vld [vmem:[%s3860_s5 + $0x3c] sm:$0xff]   ;;  %v3038_v57 = vld [vmem:[%s3860_s5 + $0x54] sm:$0xf] }
  0x94   : > { %v2472_v31 = vsel %vm4043_vm6, %v3186_v37, %v2471_v62  ;;  %v2475_v2 = vsel %vm4043_vm6, %v2473_v46, %v2474_v14  ;;  %v2478_v30 = vrot.slane %v4339_v56, 5  ;;  %v2485_v34 = vrot.slane %v4357_v38, 5  ;;  %v3182_v14 = vld [vmem:[%s3860_s5 + $0x48] sm:$0xe] }
  0x95   : > { %3510 = vmatmul.mubr.msk.bf16.gmra.mrb[4].mxu0 %vm453_vm3, %v3164_v11  ;;  %v1352_v3 = vor.u32 %v1351_v54, %v1348_v20  ;;  %v2256_v11 = vsel %vm3892_vm2, %v2251_v39, %v4527_v4  ;;  %v2266_v36 = vsel %vm3892_vm2, %v2261_v12, %v2265_v1  ;;  %v1325_v59 = vshll.u32 %v3032_v58, 16 }
  0x96   : > { %3513 = vmatprep.mubr.msk.bf16.mxu0 %vm453_vm3, %v3165_v18  ;;  %v1322_v18 = vshrl.u32 %v3032_v58, 16  ;;  %v1331_v56 = vshll.u32 %v4145_v21, 16  ;;  %v3187_v4 = vrot.slane %v3179_v16, 9  ;;  %v2481_v38 = vrot.slane %v4380_v17, 5 }
  0x97   : > { %3428 = vmatmul.mubr.msk.bf16.gmra.mrb[12].mxu1 %vm453_vm3, %v4752_v29  ;;  %v1353_v63 = vrot.slane %v1352_v3, 4  ;;  %v3196_v51 = vcombine.low %v2472_v31, %v2475_v2  ;;  %v2480_v53 = vrot.slane %v2478_v30, 4  ;;  %v3188_v33 = vrot.slane %v3180_v40, 9  ;;  %v3740_v31 = vld [vmem:[%s3860_s5 + $0x48] sm:$0xff]   ;;  %v3741_v3 = vld [vmem:[%s3860_s5 + $0x54] sm:$0xff]  }
  0x98   : > { %3433 = vmatprep.mubr.msk.bf16.mxu1 %vm453_vm3, %v3735_v60  ;;  %v1335_v60 = vshrl.u32 %v4145_v21, 16  ;;  %v3168_v43 = vcombine.low %v2256_v11, %v2266_v36  ;;  %v2487_v62 = vrot.slane %v2485_v34, 4  ;;  %v2488_v21 = vrot.slane %v4387_v49, 5 }
  0x99   : > { %v1358_v22 = vsel %vm3892_vm2, %v1353_v63, %v4495_v0  ;;  %v1324_v9 = vrot.slane %v1322_v18, 4  ;;  %v1327_v48 = vrot.slane %v1325_v59, 5  ;;  %v4589_v26 = vrot.slane %v1331_v56, 5 }
  0x9a   : > { %v1337_v17 = vrot.slane %v1335_v60, 4  ;;  %v2479_v29 = vsel %vm4043_vm6, %v3187_v4, %v2478_v30  ;;  %v2482_v0 = vsel %vm4043_vm6, %v2480_v53, %v2481_v38  ;;  %v2486_v49 = vsel %vm4043_vm6, %v3188_v33, %v2485_v34  ;;  %v3041_v34 = vld [vmem:[%s3860_s5 + $0x60] sm:$0xf]  ;;  %v3183_v4 = vld [vmem:[%s3860_s5 + $0x54] sm:$0xe]  ;;  %v4753_v38 = vld [vmem:[#allocation5_spill] sm:$0xff] }
  0x9b   : > { %v2492_v6 = vrot.slane %v4396_v10, 5  ;;  %v1341_v19 = vshll.u32 %v4148_v23, 16  ;;  %v2489_v42 = vsel %vm4043_vm6, %v2487_v62, %v2488_v21  ;;  %v1328_v37 = vor.u32 %v1327_v48, %v1324_v9  ;;  %v4755_v48 = vld [vmem:[#allocation2_spill] sm:$0xff] }
  0x9c   : > { %v1338_v46 = vor.u32 %v1337_v17, %v4589_v26  ;;  %v3197_v10 = vcombine.low %v2479_v29, %v2482_v0  ;;  %v2495_v39 = vrot.slane %v4441_v44, 5  ;;  %v1370_v12 = vshrl.u32 %v3038_v57, 16 }
  0x9d   : > { %3514 = vmatmul.mubr.msk.bf16.gmra.mrb[8].mxu0 %vm453_vm3, %v3166_v35  ;;  %v3181_v35 = vld [vmem:[%s3860_s5 + $0x3c] sm:$0xe]  ;;  %v1373_v1 = vshll.u32 %v3038_v57, 16  ;;  %v1379_v20 = vshll.u32 %v4174_v55, 16  ;;  %v2494_v58 = vrot.slane %v2492_v6, 4  ;;  %v1343_v54 = vrot.slane %v1341_v19, 5 }
  0x9e   : > { %3517 = vmatprep.mubr.msk.bf16.mxu0 %vm453_vm3, %v3167_v24  ;;  %v3189_v23 = vrot.slane %v3181_v35, 9  ;;  %v3198_v24 = vcombine.low %v2486_v49, %v2489_v42  ;;  %v1339_v2 = vrot.slane %v1338_v46, 4  ;;  %v2502_v30 = vrot.slane %v4446_v13, 5  ;;  %v3742_v35 = vld [vmem:[%s3860_s5 + $0x60] sm:$0xff]  }
  0x9f   : > { %3434 = vmatmul.mubr.msk.bf16.vlgmr.msra.gmra.mrb[0].mxu1 %vm453_vm3, %v3736_v41  ;;  %v1383_v41 = vshrl.u32 %v4174_v55, 16  ;;  %v1372_v44 = vrot.slane %v1370_v12, 4  ;;  %v1375_v11 = vrot.slane %v1373_v1, 5  ;;  %v1381_v36 = vrot.slane %v1379_v20, 5 }
  0xa0   : > { %3540 = vmatpush3.bf16.msra.mxu1 %v4437_v27  ;;  %3437 = vmatprep.mubr.msk.bf16.mxu1 %vm453_vm3, %v3737_v25  ;;  %v4586_v27 = vcombine.low %v1358_v22, %v1368_v47  ;;  %v2499_v47 = vrot.slane %v4407_v45, 5  ;;  %v3190_v25 = vrot.slane %v3182_v14, 9  ;;  %v1329_v45 = vrot.slane %v1328_v37, 4  ;;  %v4754_v22 = vld [vmem:[#allocation3_spill] sm:$0xff] }
  0xa1   : > { %v1385_v40 = vrot.slane %v1383_v41, 4  ;;  %v2493_v55 = vsel %vm4043_vm6, %v3189_v23, %v2492_v6  ;;  %v2496_v18 = vsel %vm4043_vm6, %v2494_v58, %v2495_v39  ;;  %v2506_v13 = vrot.slane %v4429_v15, 5  ;;  %v3184_v15 = vld [vmem:[%s3860_s5 + $0x60] sm:$0xe] }
  0xa2   : > { %v2501_v16 = vrot.slane %v2499_v47, 4  ;;  %v2500_v59 = vsel %vm4043_vm6, %v3190_v25, %v2499_v47  ;;  %v1334_v56 = vsel %vm3892_vm2, %v1329_v45, %v4589_v26  ;;  %v1344_v60 = vsel %vm3892_vm2, %v1339_v2, %v1343_v54  ;;  %v3185_v54 = vld [vmem:[%s3860_s5 + $0x6c] sm:$0xe] }
  0xa3   : > { %v1394_v53 = vshrl.u32 %v3041_v34, 16  ;;  %v1397_v33 = vshll.u32 %v3041_v34, 16  ;;  %v1407_v62 = vshrl.u32 %v4754_v22, 16  ;;  %v3199_v21 = vcombine.low %v2493_v55, %v2496_v18 }
  0xa4   : > { %v2503_v63 = vsel %vm4043_vm6, %v2501_v16, %v2502_v30  ;;  %v1386_v9 = vor.u32 %v1385_v40, %v1381_v36  ;;  %v1389_v26 = vshll.u32 %v4755_v48, 16  ;;  %v2508_v29 = vrot.slane %v2506_v13, 4 }
  0xa5   : > { %3518 = vmatmul.mubr.msk.bf16.gmra.mrb[12].mxu0 %vm453_vm3, %v3168_v43  ;;  %v1403_v43 = vshll.u32 %v4754_v22, 16  ;;  %v3200_v17 = vcombine.low %v2500_v59, %v2503_v63  ;;  %v2509_v0 = vrot.slane %v4482_v61, 5  ;;  %v3050_v49 = vcombine.low %v1334_v56, %v1344_v60 }
  0xa6   : > { %3523 = vmatprep.mubr.msk.bf16.mxu0 %vm453_vm3, %v3196_v51  ;;  %v2513_v51 = vrot.slane %v4753_v38, 5  ;;  %v3192_v6 = vrot.slane %v3184_v15, 9  ;;  %v2516_v57 = vrot.slane %v4503_v32, 5  ;;  %v1396_v42 = vrot.slane %v1394_v53, 4 }
  0xa7   : > { %3438 = vmatmul.mubr.msk.bf16.gmra.mrb[4].mxu1 %vm453_vm3, %v3738_v50  ;;  %v1376_v50 = vor.u32 %v1375_v11, %v1372_v44  ;;  %v1399_v37 = vrot.slane %v1397_v33, 5  ;;  %v1405_v46 = vrot.slane %v1403_v43, 5  ;;  %v1409_v14 = vrot.slane %v1407_v62, 4 }
  0xa8   : > { %3441 = vmatprep.mubr.msk.bf16.mxu1 %vm453_vm3, %v3739_v8  ;;  %v3191_v8 = vrot.slane %v3183_v4, 9  ;;  %v2515_v19 = vrot.slane %v2513_v51, 4  ;;  %v1391_v23 = vrot.slane %v1389_v26, 5  ;;  %v2510_v32 = vsel %vm4043_vm6, %v2508_v29, %v2509_v0 }
  0xa9   : > { %v1377_v47 = vrot.slane %v1376_v50, 4  ;;  %v2514_v39 = vsel %vm4043_vm6, %v3192_v6, %v2513_v51  ;;  %v2520_v12 = vrot.slane %v4491_v7, 5  ;;  %v1400_v20 = vor.u32 %v1399_v37, %v1396_v42  ;;  %v4685_v51 = vld [vmem:[%s4733_s2] ss:$0 sm:$0xff] }
  0xaa   : > { %v2507_v61 = vsel %vm4043_vm6, %v3191_v8, %v2506_v13  ;;  %v2517_v1 = vsel %vm4043_vm6, %v2515_v19, %v2516_v57  ;;  %v1410_v41 = vor.u32 %v1409_v14, %v1405_v46  ;;  %v3193_v16 = vrot.slane %v3185_v54, 9 }
  0xab   : > { %v1382_v25 = vsel %vm3892_vm2, %v1377_v47, %v1381_v36  ;;  %v3201_v45 = vcombine.low %v2507_v61, %v2510_v32  ;;  %v3202_v2 = vcombine.low %v2514_v39, %v2517_v1  ;;  %v2522_v7 = vrot.slane %v2520_v12, 4 }
  0xac   : > { %v2523_v30 = vrot.slane %v4533_v5, 5  ;;  %v1401_v44 = vrot.slane %v1400_v20, 4  ;;  %v1411_v11 = vrot.slane %v1410_v41, 4  ;;  %v2521_v36 = vsel %vm4043_vm6, %v3193_v16, %v2520_v12 }
  0xad   : > { %3524 = vmatmul.mubr.msk.bf16.vlgmr.msra.gmra.mrb[0].mxu0 %vm453_vm3, %v3197_v10  ;;  %v1387_v10 = vrot.slane %v1386_v9, 4 }
  0xae   : > { %3527 = vmatprep.mubr.msk.bf16.mxu0 %vm453_vm3, %v3198_v24  ;;  %v4756_v24 = vld [vmem:[#allocation4_spill] sm:$0xff]  ;;  %v2524_v34 = vsel %vm4043_vm6, %v2522_v7, %v2523_v30  ;;  %v1406_v5 = vsel %vm3892_vm2, %v1401_v44, %v1405_v46 }
  0xaf   : > { %3442 = vmatmul.mubr.msk.bf16.gmra.mrb[8].mxu1 %vm453_vm3, %v3740_v31  ;;  %v1413_v58 = vshll.u32 %v4756_v24, 16  ;;  %v1392_v31 = vsel %vm3892_vm2, %v1387_v10, %v1391_v23  ;;  %v3203_v18 = vcombine.low %v2521_v36, %v2524_v34 }
  0xb0   : > { %3445 = vmatprep.mubr.msk.bf16.mxu1 %vm453_vm3, %v3741_v3  ;;  %v3052_v3 = vcombine.low %v1382_v25, %v1392_v31 }
  0xb1   : > { %v1415_v40 = vrot.slane %v1413_v58, 5 }
  0xb3   : > { %v1416_v55 = vsel %vm3892_vm2, %v1411_v11, %v1415_v40 }
  0xb4   : > { %v3053_v59 = vcombine.low %v1406_v5, %v1416_v55 }
  0xb5   : > { %3528 = vmatmul.mubr.msk.bf16.gmra.mrb[4].mxu0 %vm453_vm3, %v3199_v21 }
  0xb6   : > { %3531 = vmatprep.mubr.msk.bf16.mxu0 %vm453_vm3, %v3200_v17 }
  0xb7   : > { %3446 = vmatmul.mubr.msk.bf16.gmra.mrb[12].mxu1 %vm453_vm3, %v3742_v35 }
  0xb8   : > { %3459 = vmatprep.mubr.msk.bf16.mxu1 %vm453_vm3, %v3050_v49 }
  0xbd   : > { %3532 = vmatmul.mubr.msk.bf16.gmra.mrb[8].mxu0 %vm453_vm3, %v3201_v45 }
  0xbe   : > { %3535 = vmatprep.mubr.msk.bf16.mxu0 %vm453_vm3, %v3202_v2 }
  0xbf   : > { %3460 = vmatmul.mubr.msk.bf16.vlgmr.msra.gmra.mrb[8].mxu1 %vm453_vm3, %v4586_v27 }
  0xc0   : > { %3463 = vmatprep.mubr.msk.bf16.mxu1 %vm453_vm3, %v3052_v3 }
  0xc5   : > { %3536 = vmatmul.mubr.msk.bf16.gmra.mrb[12].mxu0 %vm453_vm3, %v3203_v18 }
  0xc7   : > { %3464 = vmatmul.mubr.msk.bf16.gmra.mrb[12].mxu1 %vm453_vm3, %v3053_v59 }
 0x172   : > { %v3435_v27 = vpop.f32.mrb[0].mxu1 }
 0x173   : > { %v1122_v13 = vpop.f32.mrb[1].mxu1 }
 0x174   : > { %v3436_v56 = vpop.f32.mrb[2].mxu1 }
 0x175   : > { %v1125_v52 = vpop.f32.mrb[3].mxu1 }
 0x17a   : > { %v3439_v60 = vpop.f32.mrb[4].mxu1 }
 0x17b   : > { %v1138_v63 = vpop.f32.mrb[5].mxu1 }
 0x17c   : > { %v3440_v4 = vpop.f32.mrb[6].mxu1 }
 0x17d   : > { %v1141_v38 = vpop.f32.mrb[7].mxu1 }
 0x180   : > { %v3525_v28 = vpop.f32.mrb[0].mxu0 }
 0x181   : > { %v3541_v15 = vadd.f32 %v3525_v28, %v3435_v27  ;;  %v2616_v53 = vpop.f32.mrb[1].mxu0 }
 0x182   : > { %v3542_v33 = vadd.f32 %v2616_v53, %v1122_v13  ;;  %v3526_v22 = vpop.f32.mrb[2].mxu0 }
 0x183   : > { %v2704_v43 = vadd.f32 %v3541_v15, %v4685_v51  ;;  %v3543_v62 = vadd.f32 %v3526_v22, %v3436_v56  ;;  %v2619_v21 = vpop.f32.mrb[3].mxu0 }
 0x184   : > { %v2702_v50 = vadd.f32 %v3542_v33, %v4685_v51  ;;  %v3544_v9 = vadd.f32 %v2619_v21, %v1125_v52 }
 0x185   : > { %v2705_v48 = vadd.f32 %v3543_v62, %v4685_v51  ;;  %v2720_v17 = vmax.f32 %v2704_v43, 0.0 }
 0x186   : > { %v2703_v26 = vadd.f32 %v3544_v9, %v4685_v51  ;;  %v2718_v29 = vmax.f32 %v2702_v50, 0.0 }
 0x187   : > { %v2721_v8 = vmax.f32 %v2705_v48, 0.0 }
 0x188   : > { %v2719_v0 = vmax.f32 %v2703_v26, 0.0  ;;  %v3529_v35 = vpop.f32.mrb[4].mxu0 }
 0x189   : > { %v3257_v49 = vpack.c.bf16 %v2721_v8, %v2720_v17  ;;  %v3545_v6 = vadd.f32 %v3529_v35, %v3439_v60  ;;  %v2632_v19 = vpop.f32.mrb[5].mxu0 }
 0x18a   : > { %v3252_v57 = vpack.c.bf16 %v2719_v0, %v2718_v29  ;;  %v3546_v42 = vadd.f32 %v2632_v19, %v1138_v63  ;;  %v3530_v37 = vpop.f32.mrb[6].mxu0 }
 0x18b   : > { %3289 = vst [vmem:[%s4694_s4 + $0x8] sm:$0xff] %v3257_v49   ;;  %v2708_v46 = vadd.f32 %v3545_v6, %v4685_v51  ;;  %v3547_v14 = vadd.f32 %v3530_v37, %v3440_v4  ;;  %v2635_v47 = vpop.f32.mrb[7].mxu0 }
 0x18c   : > { %3253 = vst [vmem:[%s4694_s4] sm:$0xff] %v3252_v57   ;;  %v2706_v10 = vadd.f32 %v3546_v42, %v4685_v51  ;;  %v3548_v23 = vadd.f32 %v2635_v47, %v1141_v38 }
 0x18d   : > { %v2709_v61 = vadd.f32 %v3547_v14, %v4685_v51  ;;  %v2724_v39 = vmax.f32 %v2708_v46, 0.0 }
 0x18e   : > { %v2707_v32 = vadd.f32 %v3548_v23, %v4685_v51  ;;  %v2722_v1 = vmax.f32 %v2706_v10, 0.0 }
 0x18f   : > { %v2725_v12 = vmax.f32 %v2709_v61, 0.0 }
 0x190   : > { %v2723_v20 = vmax.f32 %v2707_v32, 0.0  ;;  %v3533_v41 = vpop.f32.mrb[8].mxu0 }
 0x191   : > { %v3267_v24 = vpack.c.bf16 %v2725_v12, %v2724_v39  ;;  %v2648_v54 = vpop.f32.mrb[9].mxu0 }
 0x192   : > { %v3461_v58 = vpop.f32.mrb[8].mxu1  ;;  %v3262_v25 = vpack.c.bf16 %v2723_v20, %v2722_v1  ;;  %v3534_v2 = vpop.f32.mrb[10].mxu0 }
 0x193   : > { %v3549_v31 = vadd.f32 %v3533_v41, %v3461_v58  ;;  %v1540_v45 = vpop.f32.mrb[9].mxu1  ;;  %3291 = vst [vmem:[%s4694_s4 + $0x18] sm:$0xff] %v3267_v24   ;;  %v2651_v30 = vpop.f32.mrb[11].mxu0 }
 0x194   : > { %v3550_v16 = vadd.f32 %v2648_v54, %v1540_v45  ;;  %v3462_v7 = vpop.f32.mrb[10].mxu1  ;;  %3290 = vst [vmem:[%s4694_s4 + $0x10] sm:$0xff] %v3262_v25  }
 0x195   : > { %v2712_v3 = vadd.f32 %v3549_v31, %v4685_v51  ;;  %v3551_v44 = vadd.f32 %v3534_v2, %v3462_v7  ;;  %v1543_v11 = vpop.f32.mrb[11].mxu1 }
 0x196   : > { %v2710_v40 = vadd.f32 %v3550_v16, %v4685_v51  ;;  %v3552_v36 = vadd.f32 %v2651_v30, %v1543_v11 }
 0x197   : > { %v2713_v34 = vadd.f32 %v3551_v44, %v4685_v51  ;;  %v2728_v55 = vmax.f32 %v2712_v3, 0.0 }
 0x198   : > { %v2711_v5 = vadd.f32 %v3552_v36, %v4685_v51  ;;  %v3537_v59 = vpop.f32.mrb[12].mxu0  ;;  %v2726_v27 = vmax.f32 %v2710_v40, 0.0 }
 0x199   : > { %v2729_v18 = vmax.f32 %v2713_v34, 0.0  ;;  %v2664_v52 = vpop.f32.mrb[13].mxu0 }
 0x19a   : > { %v2727_v13 = vmax.f32 %v2711_v5, 0.0  ;;  %v3465_v56 = vpop.f32.mrb[12].mxu1  ;;  %v3538_v38 = vpop.f32.mrb[14].mxu0 }
 0x19b   : > { %v3277_v60 = vpack.c.bf16 %v2729_v18, %v2728_v55  ;;  %v3553_v63 = vadd.f32 %v3537_v59, %v3465_v56  ;;  %v1556_v4 = vpop.f32.mrb[13].mxu1  ;;  %v2667_v33 = vpop.f32.mrb[15].mxu0 }
 0x19c   : > { %v3272_v28 = vpack.c.bf16 %v2727_v13, %v2726_v27  ;;  %v3554_v15 = vadd.f32 %v2664_v52, %v1556_v4  ;;  %v3466_v53 = vpop.f32.mrb[14].mxu1 }
 0x19d   : > { %3293 = vst [vmem:[%s4694_s4 + $0x28] sm:$0xff] %v3277_v60   ;;  %v2716_v22 = vadd.f32 %v3553_v63, %v4685_v51  ;;  %v3555_v43 = vadd.f32 %v3538_v38, %v3466_v53  ;;  %v1559_v62 = vpop.f32.mrb[15].mxu1 }
 0x19e   : > { %3292 = vst [vmem:[%s4694_s4 + $0x20] sm:$0xff] %v3272_v28   ;;  %v2714_v21 = vadd.f32 %v3554_v15, %v4685_v51  ;;  %v3556_v50 = vadd.f32 %v2667_v33, %v1559_v62 }
 0x19f   : > { %v2717_v9 = vadd.f32 %v3555_v43, %v4685_v51  ;;  %v2732_v26 = vmax.f32 %v2716_v22, 0.0 }
 0x1a0   : > { %v2715_v48 = vadd.f32 %v3556_v50, %v4685_v51  ;;  %v2730_v8 = vmax.f32 %v2714_v21, 0.0 }
 0x1a1   : > { %v2733_v17 = vmax.f32 %v2717_v9, 0.0 }
 0x1a2   : > { %v2731_v29 = vmax.f32 %v2715_v48, 0.0 }
 0x1a3   : > { %v3287_v0 = vpack.c.bf16 %v2733_v17, %v2732_v26 }
 0x1a4   : > { %v3282_v35 = vpack.c.bf16 %v2731_v29, %v2730_v8 }
 0x1a5   : > { %3295 = vst [vmem:[%s4694_s4 + $0x38] sm:$0xff] %v3287_v0  }
 0x1a6   : > { %3294 = vst [vmem:[%s4694_s4 + $0x30] sm:$0xff] %v3282_v35  }
 0x1a7 PF: > { %s13_s16 = sadd.s32 1, %s3782_s16   ;;  %s4757_s12 = smov %s3774_s14 }
 0x1a8   : > { %p10_p7 = scmp.ge.s32.totalorder %s13_s16, 6   ;;  %s4758_s13 = smov %s3778_s15 }
 0x1a9   : > { %s4759_s14 = smov %s4762_s17  ;;  %s4760_s15 = smov %s4766_s18 }
 0x1aa   :  { %12 = sbr.rel (!%p10_p7) target bundleno = 3 (0x3), region = 73 }

// kernel: _forward_impl.3
= control target key start
LH: loop header
LB: loop body
LE: loop exit
PB: predicated region body
PF: predicated region fallthrough
CT: control target
= control target key end

     0   :  { %s2226_s12 = smov 0   ;;  %s2228_s13 = smov 0   ;;  %s2503_s0 = inlined_call_operand.vmem [shape: bf16[2,4,9,17,16], index: 0, kind: input, shape index: {}]   ;;  %s2504_s1 = inlined_call_operand.vmem [shape: bf16[9,16,128], index: 1, kind: input, shape index: {}]   ;;  %s2505_s2 = inlined_call_operand.vmem [shape: f32[1,128], index: 2, kind: input, shape index: {}]   ;;  %s2506_s3 = inlined_call_operand.vmem [shape: f32[2,128,128], index: 3, kind: output, shape index: {}]  }
   0x1   :  { %s2230_s14 = smov 0   ;;  %s2232_s15 = smov 0  }
   0x2   :  { %s2234_s16 = smov 0  }
   0x3 LB: > { %s22_s17 = sadd.s32 1, %s2196_s14  ;;  %s25_s18 = sadd.s32 1, %s2200_s15  ;;  %s2204_s16 = sphi %s2234_s16, %s13_s16   ;;  %s2200_s15 = sphi %s2232_s15, %s2512_s15   ;;  %s2196_s14 = sphi %s2230_s14, %s2511_s14   ;;  %s2192_s13 = sphi %s2228_s13, %s2510_s13   ;;  %s2188_s12 = sphi %s2226_s12, %s2509_s12  }
   0x4   : > { %p23_p0 = scmp.ge.s32.totalorder %s22_s17, 2  ;;  %p1710_p1 = scmp.ge.s32.totalorder %s2204_s16, 1 }
   0x5   : > { %p151_p2 = scmp.lt.s32.totalorder %s2204_s16, 5 }
   0x6   : > { %s2514_s17 = smov (%p23_p0, %s22_s17), 0  ;;  %s2516_s18 = smov (!%p23_p0, %s25_s18), %s2200_s15 }
   0x7   : > { %p152_p3 = pnand %p1710_p1, %p151_p2  ;;  %p27_p4 = scmp.ge.s32.totalorder %s2516_s18, 2 }
   0x8   : > { %v2133_v0 = vld [vmem:[%s2504_s1 + $0x8] sm:$0xff] (!%p152_p3)   ;;  %p179_p5 = scmp.lt.s32.totalorder (!%p152_p3), %s2192_s13, 1  ;;  %v2264_v1 = vld [vmem:[%s2504_s1 + $0x20] sm:$0xff] (!%p152_p3)   ;;  %s1890_s23 = smul.u32 (!%p152_p3), 48, %s2188_s12  ;;  %vm249_vm0 = vcmask (!%p152_p3), 130048   ;;  %v2288_v6 = vld [vmem:[%s2504_s1 + $0x30] sm:$0xff] (!%p152_p3)  }
   0x9   : > { %s2518_s18 = smov (%p27_p4, %s2516_s18), 0  ;;  %155 = sbr.rel (%p152_p3) target bundleno = 316 (0x13c), region = 32 }
   0xa   : > { %1936 = vmatprep.subr.bf16.mxu1 (!%p152_p3), %v2133_v0  ;;  %1976 = vmatprep.subr.bf16.mxu0 (!%p152_p3), %v2264_v1  ;;  %v2136_v2 = vld [vmem:[%s2504_s1] sm:$0xff] (!%p152_p3)   ;;  %v2138_v3 = vld [vmem:[%s2504_s1 + $0x28] sm:$0xff] (!%p152_p3)   ;;  %vm442_vm1 = vsmask.f32 (!%p152_p3), 3328  ;;  %v2293_v7 = vld [vmem:[%s2504_s1 + $0x10] sm:$0xff] (!%p152_p3)  }
   0xb   : > { %1937 = vmatpush3.bf16.msra.mxu1 (!%p152_p3), %v2133_v0  ;;  %1977 = vmatpush3.bf16.msra.mxu0 (!%p152_p3), %v2264_v1  ;;  %vm443_vm2 = vsmask.f32 (!%p152_p3), 7440  ;;  %v1887_v37 = vld [vmem:[%s2505_s2] ss:$0 sm:$0xff] (!%p152_p3) }
   0xc   : > { %1946 = vmatprep.subr.bf16.mxu1 (!%p152_p3), %v2136_v2  ;;  %1986 = vmatprep.subr.bf16.mxu0 (!%p152_p3), %v2138_v3  ;;  %vm2316_vm3 = vmor (!%p152_p3), %vm442_vm1, %vm443_vm2 }
  0x10   : > { %s2520_s13 = smov (!%p179_p5, %s2192_s13), 1 }
  0x11   : > { %s2092_s26 = smul.u32 432, %s2520_s13  ;;  %s1713_s24 = sshll.u32 %s2520_s13, 4 }
  0x13   : > { %s183_s4 = scalar_lea.vmem %s2503_s0, %s2092_s26 }
  0x14   : > { %s2281_s5 = scalar_lea.vmem %s183_s4, %s1890_s23  ;;  %s1712_s23 = sshll.u32 %s2188_s12, 3 }
  0x15   : > { %v2135_v4 = vld [vmem:[%s2281_s5 + $0x6c] sm:$0xff]   ;;  %v2137_v5 = vld [vmem:[%s2281_s5 + $0x144] sm:$0xff]   ;;  %v2139_v8 = vld [vmem:[%s2281_s5 + $0x78] sm:$0xff]   ;;  %p187_p6 = scmp.lt.s32.totalorder %s1712_s23, 15 }
  0x16   : > { %1938 = vmatprep.mubr.msk.bf16.mxu1 %vm249_vm0, %v2135_v4  ;;  %1978 = vmatprep.mubr.msk.bf16.mxu0 %vm249_vm0, %v2137_v5  ;;  %v2140_v9 = vld [vmem:[%s2281_s5 + $0x150] sm:$0xff]   ;;  %v2141_v10 = vld [vmem:[%s2281_s5 + $0x84] sm:$0xff]   ;;  %v1798_v12 = vld [vmem:[%s2281_s5 + $0xd8] sm:$0xf] }
  0x17   : > { %1939 = vmatmul.mubr.msk.bf16.vlgmr.msra.gmra.mrb[0].mxu1 %vm249_vm0, %v2139_v8  ;;  %1979 = vmatmul.mubr.msk.bf16.vlgmr.msra.gmra.mrb[0].mxu0 %vm249_vm0, %v2140_v9  ;;  %v2142_v11 = vld [vmem:[%s2281_s5 + $0x90] sm:$0xff]   ;;  %v1799_v13 = vld [vmem:[%s2281_s5 + $0xdc] sm:$0xf]  ;;  %v1800_v14 = vld [vmem:[%s2281_s5 + $0xe0] sm:$0x1]  ;;  %v910_v15 = vshrl.u32 %v1798_v12, 16 }
  0x18   : > { %1947 = vmatpush3.bf16.msra.mxu1 %v2136_v2  ;;  %1987 = vmatpush3.bf16.msra.mxu0 %v2138_v3  ;;  %v913_v16 = vshll.u32 %v1798_v12, 16  ;;  %v919_v17 = vshll.u32 %v1799_v13, 16  ;;  %v923_v18 = vshrl.u32 %v1799_v13, 16  ;;  %v1801_v19 = vld [vmem:[%s2281_s5 + $0xe4] sm:$0xf]  ;;  %v929_v20 = vshll.u32 %v1800_v14, 16 }
  0x19   : > { %1942 = vmatprep.mubr.msk.bf16.mxu1 %vm249_vm0, %v2141_v10  ;;  %1996 = vmatprep.subr.bf16.mxu0 %v2288_v6  ;;  %v1802_v21 = vld [vmem:[%s2281_s5 + $0xe8] sm:$0xf]  ;;  %v1803_v22 = vld [vmem:[%s2281_s5 + $0xec] sm:$0x1]  ;;  %v934_v23 = vshrl.u32 %v1801_v19, 16  ;;  %v912_v24 = vrot.slane %v910_v15, 4 }
  0x1a   : > { %1956 = vmatprep.subr.bf16.mxu1 %v2293_v7  ;;  %v915_v25 = vrot.slane %v913_v16, 5  ;;  %v921_v26 = vrot.slane %v919_v17, 5  ;;  %v925_v27 = vrot.slane %v923_v18, 4  ;;  %v931_v28 = vrot.slane %v929_v20, 5  ;;  %v2144_v36 = vld [vmem:[%s2281_s5] sm:$0xff]   ;;  %v2146_v54 = vld [vmem:[%s2281_s5 + $0xc] sm:$0xff]  }
  0x1b   : > { %v936_v29 = vrot.slane %v934_v23, 4  ;;  %v937_v30 = vshll.u32 %v1801_v19, 16  ;;  %v943_v31 = vshll.u32 %v1802_v21, 16  ;;  %v947_v34 = vshrl.u32 %v1802_v21, 16  ;;  %v1804_v40 = vld [vmem:[%s2281_s5 + $0xf0] sm:$0xf] }
  0x1c   : > { %v916_v32 = vor.u32 %v915_v25, %v912_v24  ;;  %v926_v33 = vor.u32 %v925_v27, %v921_v26  ;;  %v953_v35 = vshll.u32 %v1803_v22, 16  ;;  %v1805_v45 = vld [vmem:[%s2281_s5 + $0xf4] sm:$0xf]  ;;  %v1806_v47 = vld [vmem:[%s2281_s5 + $0xf8] sm:$0x1]  ;;  %v958_v48 = vshrl.u32 %v1804_v40, 16 }
  0x1d   : > { %v939_v38 = vrot.slane %v937_v30, 5  ;;  %v945_v39 = vrot.slane %v943_v31, 5  ;;  %v949_v43 = vrot.slane %v947_v34, 4  ;;  %v961_v49 = vshll.u32 %v1804_v40, 16  ;;  %v1807_v56 = vld [vmem:[%s2281_s5 + $0xfc] sm:$0xf] }
  0x1e   : > { %v917_v41 = vrot.slane %v916_v32, 4  ;;  %v927_v42 = vrot.slane %v926_v33, 4  ;;  %v955_v44 = vrot.slane %v953_v35, 5  ;;  %v967_v50 = vshll.u32 %v1805_v45, 16  ;;  %v1808_v57 = vld [vmem:[%s2281_s5 + $0x100] sm:$0xf] }
  0x1f   : > { %1943 = vmatmul.mubr.msk.bf16.gmra.mrb[4].mxu1 %vm249_vm0, %v2142_v11  ;;  %v940_v46 = vor.u32 %v939_v38, %v936_v29  ;;  %v950_v53 = vor.u32 %v949_v43, %v945_v39  ;;  %v971_v55 = vshrl.u32 %v1805_v45, 16  ;;  %v960_v60 = vrot.slane %v958_v48, 4  ;;  %v1809_v62 = vld [vmem:[%s2281_s5 + $0x104] sm:$0x1]  ;;  %v2147_v63 = vld [vmem:[%s2281_s5 + $0x18] sm:$0xff]   ;;  %s2522_s23 = smov (!%p187_p6, %s1712_s23), 15 }
  0x20   : > { %1948 = vmatprep.mubr.msk.bf16.mxu1 %vm249_vm0, %v2144_v36  ;;  %v922_v51 = vsel %vm2316_vm3, %v917_v41, %v921_v26  ;;  %v932_v52 = vsel %vm2316_vm3, %v927_v42, %v931_v28  ;;  %v963_v61 = vrot.slane %v961_v49, 5  ;;  %v969_v2 = vrot.slane %v967_v50, 5  ;;  %v2342_v19 = vld [vmem:[%s2504_s1 + $0x38] sm:$0xff]   ;;  %v2148_v26 = vld [vmem:[%s2281_s5 + $0x24] sm:$0xff]   ;;  %v430_v27 = vld [vmem:[%s2281_s5] sm:$0xf]  ;;  %s190_s25 = sadd.s32 %s1713_s24, %s2522_s23 }
  0x21   : > { %v1812_v58 = vcombine.low %v922_v51, %v932_v52  ;;  %v941_v59 = vrot.slane %v940_v46, 4  ;;  %v951_v0 = vrot.slane %v950_v53, 4  ;;  %v973_v3 = vrot.slane %v971_v55, 4  ;;  %v431_v30 = vld [vmem:[%s2281_s5 + $0x4] sm:$0xf]  ;;  %v2360_v36 = vld [vmem:[%s2504_s1 + $0x18] sm:$0xff]  }
  0x22   : > { %v977_v4 = vshll.u32 %v1806_v47, 16  ;;  %v964_v8 = vor.u32 %v963_v61, %v960_v60  ;;  %v982_v9 = vshrl.u32 %v1807_v56, 16  ;;  %v985_v10 = vshll.u32 %v1807_v56, 16  ;;  %v432_v31 = vld [vmem:[%s2281_s5 + $0x8] sm:$0x1]  ;;  %v2149_v51 = vld [vmem:[%s2281_s5 + $0xc] sm:$0xff]  }
  0x23   : > { %1988 = vmatprep.mubr.msk.bf16.mxu0 %vm249_vm0, %v1812_v58  ;;  %v946_v5 = vsel %vm2316_vm3, %v941_v59, %v945_v39  ;;  %v956_v11 = vsel %vm2316_vm3, %v951_v0, %v955_v44  ;;  %v974_v12 = vor.u32 %v973_v3, %v969_v2  ;;  %v991_v14 = vshll.u32 %v1808_v57, 16  ;;  %v433_v44 = vld [vmem:[%s2281_s5 + $0xc] sm:$0xf]  ;;  %v434_v45 = vld [vmem:[%s2281_s5 + $0x10] sm:$0xf]  ;;  %s1714_s26 = sshll.u32 %s190_s25, 3 }
  0x24   : > { %v979_v13 = vrot.slane %v977_v4, 5  ;;  %v1813_v15 = vcombine.low %v946_v5, %v956_v11  ;;  %v965_v16 = vrot.slane %v964_v8, 4  ;;  %v984_v17 = vrot.slane %v982_v9, 4  ;;  %v435_v50 = vld [vmem:[%s2281_s5 + $0x14] sm:$0x1]  ;;  %s2478_s12 = scalar_lea.vmem %s2506_s3, %s1714_s26 }
  0x25   : > { %v987_v18 = vrot.slane %v985_v10, 5  ;;  %v975_v20 = vrot.slane %v974_v12, 4  ;;  %v993_v21 = vrot.slane %v991_v14, 5  ;;  %v995_v22 = vshrl.u32 %v1808_v57, 16  ;;  %v436_v5 = vld [vmem:[%s2281_s5 + $0x18] sm:$0xf] }
  0x26   : > { %v1001_v23 = vshll.u32 %v1809_v62, 16  ;;  %1989 = vmatmul.mubr.msk.bf16.vlgmr.msra.gmra.mrb[0].mxu0 %vm249_vm0, %v1813_v15  ;;  %v970_v24 = vsel %vm2316_vm3, %v965_v16, %v969_v2  ;;  %v446_v34 = vshrl.u32 %v430_v27, 16  ;;  %v449_v35 = vshll.u32 %v430_v27, 16  ;;  %v437_v10 = vld [vmem:[%s2281_s5 + $0x1c] sm:$0xf] }
  0x27   : > { %1949 = vmatmul.mubr.msk.bf16.vlgmr.msra.gmra.mrb[0].mxu1 %vm249_vm0, %v2146_v54  ;;  %v988_v25 = vor.u32 %v987_v18, %v984_v17  ;;  %1997 = vmatpush3.bf16.msra.mxu0 %v2288_v6  ;;  %v997_v28 = vrot.slane %v995_v22, 4  ;;  %v455_v38 = vshll.u32 %v431_v30, 16  ;;  %v459_v39 = vshrl.u32 %v431_v30, 16  ;;  %v438_v11 = vld [vmem:[%s2281_s5 + $0x20] sm:$0x1] }
  0x28   : > { %1957 = vmatpush3.bf16.msra.mxu1 %v2293_v7  ;;  %1952 = vmatprep.mubr.msk.bf16.mxu1 %vm249_vm0, %v2147_v63  ;;  %v980_v7 = vsel %vm2316_vm3, %v975_v20, %v979_v13  ;;  %v1003_v29 = vrot.slane %v1001_v23, 5  ;;  %v465_v40 = vshll.u32 %v432_v31, 16  ;;  %v448_v42 = vrot.slane %v446_v34, 4  ;;  %v439_v18 = vld [vmem:[%s2281_s5 + $0x24] sm:$0xf] }
  0x29   : > { %v1814_v32 = vcombine.low %v970_v24, %v980_v7  ;;  %v989_v33 = vrot.slane %v988_v25, 4  ;;  %2006 = vmatprep.subr.bf16.mxu0 %v2342_v19  ;;  %v998_v6 = vor.u32 %v997_v28, %v993_v21  ;;  %v451_v43 = vrot.slane %v449_v35, 5  ;;  %1966 = vmatprep.subr.bf16.mxu1 %v2360_v36  ;;  %v440_v20 = vld [vmem:[%s2281_s5 + $0x28] sm:$0xf] }
  0x2a   : > { %v457_v47 = vrot.slane %v455_v38, 5  ;;  %v461_v48 = vrot.slane %v459_v39, 4  ;;  %v467_v49 = vrot.slane %v465_v40, 5  ;;  %v470_v53 = vshrl.u32 %v433_v44, 16  ;;  %v2153_v31 = vld [vmem:[%s2281_s5 + $0x24] sm:$0xff]  }
  0x2b   : > { %1992 = vmatprep.mubr.msk.bf16.mxu0 %vm249_vm0, %v1814_v32  ;;  %v994_v41 = vsel %vm2316_vm3, %v989_v33, %v993_v21  ;;  %v999_v46 = vrot.slane %v998_v6, 4  ;;  %v452_v52 = vor.u32 %v451_v43, %v448_v42  ;;  %v473_v54 = vshll.u32 %v433_v44, 16  ;;  %v2151_v21 = vld [vmem:[%s2281_s5 + $0x18] sm:$0xff]   ;;  %v2395_v44 = vld [vmem:[%s2504_s1 + $0x40] sm:$0xff]  }
  0x2c   : > { %v479_v55 = vshll.u32 %v434_v45, 16  ;;  %v462_v57 = vor.u32 %v461_v48, %v457_v47  ;;  %v483_v58 = vshrl.u32 %v434_v45, 16  ;;  %v489_v59 = vshll.u32 %v435_v50, 16 }
  0x2d   : > { %v1004_v56 = vsel %vm2316_vm3, %v999_v46, %v1003_v29  ;;  %v453_v61 = vrot.slane %v452_v52, 4  ;;  %v472_v62 = vrot.slane %v470_v53, 4  ;;  %v475_v63 = vrot.slane %v473_v54, 5 }
  0x2e   : > { %v1815_v60 = vcombine.low %v994_v41, %v1004_v56  ;;  %v463_v0 = vrot.slane %v462_v57, 4  ;;  %v481_v2 = vrot.slane %v479_v55, 5  ;;  %v485_v3 = vrot.slane %v483_v58, 4  ;;  %v2155_v58 = vld [vmem:[%s2281_s5 + $0x78] sm:$0xff]  }
  0x2f   : > { %1953 = vmatmul.mubr.msk.bf16.gmra.mrb[4].mxu1 %vm249_vm0, %v2148_v26  ;;  %v491_v4 = vrot.slane %v489_v59, 5  ;;  %v458_v8 = vsel %vm2316_vm3, %v453_v61, %v457_v47  ;;  %v476_v9 = vor.u32 %v475_v63, %v472_v62  ;;  %v494_v12 = vshrl.u32 %v436_v5, 16  ;;  %v441_v26 = vld [vmem:[%s2281_s5 + $0x2c] sm:$0x1]  ;;  %v1866_v61 = vld [vmem:[%s2281_s5 + $0x14] sm:$0x1] }
  0x30   : > { %1993 = vmatmul.mubr.msk.bf16.gmra.mrb[4].mxu0 %vm249_vm0, %v1815_v60  ;;  %v497_v13 = vshll.u32 %v436_v5, 16  ;;  %v468_v14 = vsel %vm2316_vm3, %v463_v0, %v467_v49  ;;  %v486_v15 = vor.u32 %v485_v3, %v481_v2  ;;  %v503_v16 = vshll.u32 %v437_v10, 16  ;;  %v1864_v59 = vld [vmem:[%s2281_s5 + $0xc] sm:$0xf]  ;;  %v1865_v60 = vld [vmem:[%s2281_s5 + $0x10] sm:$0xf] }
  0x31   : > { %1998 = vmatprep.mubr.msk.bf16.mxu0 %vm249_vm0, %v2149_v51  ;;  %v507_v17 = vshrl.u32 %v437_v10, 16  ;;  %v1749_v22 = vcombine.low %v458_v8, %v468_v14  ;;  %v477_v23 = vrot.slane %v476_v9, 4  ;;  %v496_v24 = vrot.slane %v494_v12, 4  ;;  %v1867_v8 = vld [vmem:[%s2281_s5 + $0x18] sm:$0xf] }
  0x32   : > { %v499_v25 = vrot.slane %v497_v13, 5  ;;  %v487_v27 = vrot.slane %v486_v15, 4  ;;  %v505_v7 = vrot.slane %v503_v16, 5  ;;  %v513_v29 = vshll.u32 %v438_v11, 16  ;;  %v1868_v12 = vld [vmem:[%s2281_s5 + $0x1c] sm:$0xf] }
  0x33   : > { %v509_v28 = vrot.slane %v507_v17, 4  ;;  %1958 = vmatprep.mubr.msk.bf16.mxu1 %vm249_vm0, %v1749_v22  ;;  %v482_v30 = vsel %vm2316_vm3, %v477_v23, %v481_v2  ;;  %v518_v33 = vshrl.u32 %v439_v18, 16  ;;  %v521_v34 = vshll.u32 %v439_v18, 16  ;;  %v2158_v2 = vld [vmem:[%s2281_s5 + $0xd8] sm:$0xff]   ;;  %v2157_v16 = vld [vmem:[%s2281_s5 + $0x84] sm:$0xff]   ;;  %v2160_v22 = vld [vmem:[%s2281_s5 + $0x90] sm:$0xff]  }
  0x34   : > { %v500_v32 = vor.u32 %v499_v25, %v496_v24  ;;  %v492_v35 = vsel %vm2316_vm3, %v487_v27, %v491_v4  ;;  %v515_v38 = vrot.slane %v513_v29, 5  ;;  %v527_v39 = vshll.u32 %v440_v20, 16  ;;  %v1870_v25 = vld [vmem:[%s2281_s5 + $0x24] sm:$0xf] }
  0x35   : > { %v510_v6 = vor.u32 %v509_v28, %v505_v7  ;;  %v1750_v40 = vcombine.low %v482_v30, %v492_v35  ;;  %v520_v42 = vrot.slane %v518_v33, 4  ;;  %v523_v43 = vrot.slane %v521_v34, 5  ;;  %v1872_v33 = vld [vmem:[%s2281_s5 + $0x2c] sm:$0x1] }
  0x36   : > { %v501_v41 = vrot.slane %v500_v32, 4  ;;  %v529_v46 = vrot.slane %v527_v39, 5  ;;  %v531_v47 = vshrl.u32 %v440_v20, 16  ;;  %v537_v48 = vshll.u32 %v441_v26, 16  ;;  %v1871_v26 = vld [vmem:[%s2281_s5 + $0x28] sm:$0xf] }
  0x37   : > { %v511_v45 = vrot.slane %v510_v6, 4  ;;  %1959 = vmatmul.mubr.msk.bf16.vlgmr.msra.gmra.mrb[0].mxu1 %vm249_vm0, %v1750_v40  ;;  %v524_v50 = vor.u32 %v523_v43, %v520_v42  ;;  %v1375_v62 = vshrl.u32 %v1864_v59, 16  ;;  %v1378_v63 = vshll.u32 %v1864_v59, 16  ;;  %v2159_v6 = vld [vmem:[%s2281_s5 + $0xe4] sm:$0xff]   ;;  %v1873_v39 = vld [vmem:[%s2281_s5 + $0x30] sm:$0xf] }
  0x38   : > { %1999 = vmatmul.mubr.msk.bf16.vlgmr.msra.gmra.mrb[0].mxu0 %vm249_vm0, %v2151_v21  ;;  %v506_v49 = vsel %vm2316_vm3, %v501_v41, %v505_v7  ;;  %1967 = vmatpush3.bf16.msra.mxu1 %v2360_v36  ;;  %v533_v52 = vrot.slane %v531_v47, 4  ;;  %v539_v55 = vrot.slane %v537_v48, 5  ;;  %v1384_v3 = vshll.u32 %v1865_v60, 16  ;;  %v1869_v7 = vld [vmem:[%s2281_s5 + $0x20] sm:$0x1]  ;;  %v2162_v40 = vld [vmem:[%s2281_s5 + $0xf0] sm:$0xff]  }
  0x39   : > { %2007 = vmatpush3.bf16.msra.mxu0 %v2342_v19  ;;  %v516_v51 = vsel %vm2316_vm3, %v511_v45, %v515_v38  ;;  %2002 = vmatprep.mubr.msk.bf16.mxu0 %vm249_vm0, %v2153_v31  ;;  %v525_v54 = vrot.slane %v524_v50, 4  ;;  %v2154_v19 = vld [vmem:[%s2281_s5 + $0x30] sm:$0xff]   ;;  %v1388_v4 = vshrl.u32 %v1865_v60, 16  ;;  %v1394_v5 = vshll.u32 %v1866_v61, 16  ;;  %v2163_v61 = vld [vmem:[%s2281_s5 + $0xfc] sm:$0xff]  }
  0x3a   : > { %v1751_v53 = vcombine.low %v506_v49, %v516_v51  ;;  %2016 = vmatprep.subr.bf16.mxu0 %v2395_v44  ;;  %v534_v56 = vor.u32 %v533_v52, %v529_v46  ;;  %2026 = vmatprep.subr.bf16.mxu1 %v2264_v1  ;;  %v1377_v10 = vrot.slane %v1375_v62, 4  ;;  %v1380_v11 = vrot.slane %v1378_v63, 5  ;;  %v1874_v45 = vld [vmem:[%s2281_s5 + $0x34] sm:$0xf] }
  0x3b   : > { %v530_v36 = vsel %vm2316_vm3, %v525_v54, %v529_v46  ;;  %v1386_v13 = vrot.slane %v1384_v3, 5  ;;  %v1390_v14 = vrot.slane %v1388_v4, 4  ;;  %v1399_v15 = vshrl.u32 %v1867_v8, 16 }
  0x3c   : > { %1962 = vmatprep.mubr.msk.bf16.mxu1 %vm249_vm0, %v1751_v53  ;;  %v535_v57 = vrot.slane %v534_v56, 4  ;;  %v1381_v17 = vor.u32 %v1380_v11, %v1377_v10  ;;  %v1402_v18 = vshll.u32 %v1867_v8, 16  ;;  %v1408_v20 = vshll.u32 %v1868_v12, 16  ;;  %v1875_v8 = vld [vmem:[%s2281_s5 + $0x38] sm:$0x1] }
  0x3d   : > { %v1412_v21 = vshrl.u32 %v1868_v12, 16  ;;  %v1391_v23 = vor.u32 %v1390_v14, %v1386_v13  ;;  %v1396_v24 = vrot.slane %v1394_v5, 5  ;;  %v1401_v28 = vrot.slane %v1399_v15, 4 }
  0x3e   : > { %v540_v0 = vsel %vm2316_vm3, %v535_v57, %v539_v55  ;;  %v1382_v27 = vrot.slane %v1381_v17, 4  ;;  %v1404_v29 = vrot.slane %v1402_v18, 5  ;;  %v1410_v30 = vrot.slane %v1408_v20, 5 }
  0x3f   : > { %v1752_v9 = vcombine.low %v530_v36, %v540_v0  ;;  %v1392_v31 = vrot.slane %v1391_v23, 4  ;;  %v1414_v32 = vrot.slane %v1412_v21, 4  ;;  %v1423_v34 = vshrl.u32 %v1870_v25, 16  ;;  %v2161_v36 = vld [vmem:[%s2281_s5 + $0x9c] sm:$0xff]  }
  0x40   : > { %2003 = vmatmul.mubr.msk.bf16.gmra.mrb[4].mxu0 %vm249_vm0, %v2154_v19  ;;  %v1426_v35 = vshll.u32 %v1870_v25, 16  ;;  %v1432_v38 = vshll.u32 %v1871_v26, 16  ;;  %v1436_v43 = vshrl.u32 %v1871_v26, 16  ;;  %v1387_v46 = vsel %vm2316_vm3, %v1382_v27, %v1386_v13  ;;  %v2165_v25 = vld [vmem:[%s2281_s5 + $0x168] sm:$0xff]  }
  0x41   : > { %2008 = vmatprep.mubr.msk.bf16.mxu0 %vm249_vm0, %v2155_v58  ;;  %1963 = vmatmul.mubr.msk.bf16.gmra.mrb[4].mxu1 %vm249_vm0, %v1752_v9  ;;  %v1425_v41 = vrot.slane %v1423_v34, 4  ;;  %v1405_v47 = vor.u32 %v1404_v29, %v1401_v28  ;;  %v1418_v48 = vshll.u32 %v1869_v7, 16  ;;  %v1397_v50 = vsel %vm2316_vm3, %v1392_v31, %v1396_v24  ;;  %v2164_v9 = vld [vmem:[%s2281_s5 + $0x15c] sm:$0xff]  }
  0x42   : > { %1968 = vmatprep.mubr.msk.bf16.mxu1 %vm249_vm0, %v2158_v2  ;;  %v1428_v42 = vrot.slane %v1426_v35, 5  ;;  %v1434_v49 = vrot.slane %v1432_v38, 5  ;;  %v1415_v51 = vor.u32 %v1414_v32, %v1410_v30  ;;  %v1438_v52 = vrot.slane %v1436_v43, 4 }
  0x43   : > { %v1447_v53 = vshrl.u32 %v1873_v39, 16  ;;  %v1442_v55 = vshll.u32 %v1872_v33, 16  ;;  %v1450_v56 = vshll.u32 %v1873_v39, 16  ;;  %v1456_v19 = vshll.u32 %v1874_v45, 16 }
  0x44   : > { %v1429_v54 = vor.u32 %v1428_v42, %v1425_v41  ;;  %v1878_v57 = vcombine.low %v1387_v46, %v1397_v50  ;;  %v1406_v58 = vrot.slane %v1405_v47, 4  ;;  %v1420_v59 = vrot.slane %v1418_v48, 5 }
  0x45   : > { %v1460_v60 = vshrl.u32 %v1874_v45, 16  ;;  %v1416_v62 = vrot.slane %v1415_v51, 4  ;;  %v1449_v63 = vrot.slane %v1447_v53, 4  ;;  %v1452_v0 = vrot.slane %v1450_v56, 5 }
  0x46   : > { %v1458_v2 = vrot.slane %v1456_v19, 5  ;;  %v1430_v3 = vrot.slane %v1429_v54, 4  ;;  %v1444_v5 = vrot.slane %v1442_v55, 5  ;;  %v1411_v10 = vsel %vm2316_vm3, %v1406_v58, %v1410_v30 }
  0x47   : > { %v1421_v11 = vsel %vm2316_vm3, %v1416_v62, %v1420_v59  ;;  %v1453_v12 = vor.u32 %v1452_v0, %v1449_v63  ;;  %v1466_v14 = vshll.u32 %v1875_v8, 16 }
  0x48   : > { %2009 = vmatmul.mubr.msk.bf16.vlgmr.msra.gmra.mrb[0].mxu0 %vm249_vm0, %v2157_v16  ;;  %v1435_v15 = vsel %vm2316_vm3, %v1430_v3, %v1434_v49  ;;  %v1879_v17 = vcombine.low %v1411_v10, %v1421_v11 }
  0x49   : > { %2017 = vmatpush3.bf16.msra.mxu0 %v2395_v44  ;;  %2012 = vmatprep.mubr.msk.bf16.mxu0 %vm249_vm0, %v2160_v22  ;;  %v1439_v44 = vor.u32 %v1438_v52, %v1434_v49  ;;  %v1454_v20 = vrot.slane %v1453_v12, 4  ;;  %v1468_v22 = vrot.slane %v1466_v14, 5 }
  0x4a   : > { %1969 = vmatmul.mubr.msk.bf16.vlgmr.msra.gmra.mrb[0].mxu1 %vm249_vm0, %v2159_v6 }
  0x4b   : > { %2027 = vmatpush3.bf16.msra.mxu1 %v2264_v1  ;;  %1972 = vmatprep.mubr.msk.bf16.mxu1 %vm249_vm0, %v2162_v40  ;;  %v1440_v4 = vrot.slane %v1439_v44, 4  ;;  %v1462_v1 = vrot.slane %v1460_v60, 4  ;;  %v1459_v23 = vsel %vm2316_vm3, %v1454_v20, %v1458_v2 }
  0x4d   : > { %v1463_v13 = vor.u32 %v1462_v1, %v1458_v2  ;;  %v1445_v16 = vsel %vm2316_vm3, %v1440_v4, %v1444_v5 }
  0x4e   : > { %v1880_v18 = vcombine.low %v1435_v15, %v1445_v16 }
  0x4f   : > { %v1464_v21 = vrot.slane %v1463_v13, 4 }
  0x50   : > { %2013 = vmatmul.mubr.msk.bf16.gmra.mrb[4].mxu0 %vm249_vm0, %v2161_v36 }
  0x51   : > { %2018 = vmatprep.mubr.msk.bf16.mxu0 %vm249_vm0, %v1878_v57  ;;  %v1469_v24 = vsel %vm2316_vm3, %v1464_v21, %v1468_v22 }
  0x52   : > { %1973 = vmatmul.mubr.msk.bf16.gmra.mrb[4].mxu1 %vm249_vm0, %v2163_v61  ;;  %v1881_v26 = vcombine.low %v1459_v23, %v1469_v24 }
  0x53   : > { %1982 = vmatprep.mubr.msk.bf16.mxu1 %vm249_vm0, %v2164_v9 }
  0x58   : > { %2019 = vmatmul.mubr.msk.bf16.vlgmr.msra.gmra.mrb[0].mxu0 %vm249_vm0, %v1879_v17 }
  0x59   : > { %2022 = vmatprep.mubr.msk.bf16.mxu0 %vm249_vm0, %v1880_v18 }
  0x5e   : > { %1983 = vmatmul.mubr.msk.bf16.vlgmr.msra.gmra.mrb[4].mxu1 %vm249_vm0, %v2165_v25 }
  0x60   : > { %2023 = vmatmul.mubr.msk.bf16.gmra.mrb[4].mxu0 %vm249_vm0, %v1881_v26 }
 0x11d   : > { %v1970_v27 = vpop.f32.mrb[0].mxu1 }
 0x11e   : > { %v733_v7 = vpop.f32.mrb[1].mxu1 }
 0x11f   : > { %v1971_v28 = vpop.f32.mrb[2].mxu1 }
 0x120   : > { %v736_v29 = vpop.f32.mrb[3].mxu1 }
 0x12b   : > { %v2020_v30 = vpop.f32.mrb[0].mxu0 }
 0x12c   : > { %v2028_v31 = vadd.f32 %v2020_v30, %v1970_v27  ;;  %v1537_v32 = vpop.f32.mrb[1].mxu0 }
 0x12d   : > { %v2029_v33 = vadd.f32 %v1537_v32, %v733_v7  ;;  %v2021_v34 = vpop.f32.mrb[2].mxu0 }
 0x12e   : > { %v1585_v35 = vadd.f32 %v2028_v31, %v1887_v37  ;;  %v2030_v6 = vadd.f32 %v2021_v34, %v1971_v28  ;;  %v1540_v38 = vpop.f32.mrb[3].mxu0 }
 0x12f   : > { %v1583_v39 = vadd.f32 %v2029_v33, %v1887_v37  ;;  %v2031_v40 = vadd.f32 %v1540_v38, %v736_v29 }
 0x130   : > { %1593 = vst [vmem:[%s2478_s12 + $0x10] sm:$0xff] %v1585_v35  ;;  %v1586_v41 = vadd.f32 %v2030_v6, %v1887_v37 }
 0x131   : > { %1591 = vst [vmem:[%s2478_s12] sm:$0xff] %v1583_v39  ;;  %v1584_v42 = vadd.f32 %v2031_v40, %v1887_v37  ;;  %v1984_v43 = vpop.f32.mrb[4].mxu1 }
 0x132   : > { %1594 = vst [vmem:[%s2478_s12 + $0x18] sm:$0xff] %v1586_v41  ;;  %v874_v45 = vpop.f32.mrb[5].mxu1 }
 0x133   : > { %1592 = vst [vmem:[%s2478_s12 + $0x8] sm:$0xff] %v1584_v42  ;;  %v2024_v46 = vpop.f32.mrb[4].mxu0  ;;  %v1985_v47 = vpop.f32.mrb[6].mxu1 }
 0x134   : > { %v2032_v48 = vadd.f32 %v2024_v46, %v1984_v43  ;;  %v1553_v49 = vpop.f32.mrb[5].mxu0  ;;  %v877_v50 = vpop.f32.mrb[7].mxu1 }
 0x135   : > { %v2033_v51 = vadd.f32 %v1553_v49, %v874_v45  ;;  %v2025_v52 = vpop.f32.mrb[6].mxu0 }
 0x136   : > { %v1589_v53 = vadd.f32 %v2032_v48, %v1887_v37  ;;  %v2034_v54 = vadd.f32 %v2025_v52, %v1985_v47  ;;  %v1556_v55 = vpop.f32.mrb[7].mxu0 }
 0x137   : > { %v1587_v56 = vadd.f32 %v2033_v51, %v1887_v37  ;;  %v2035_v19 = vadd.f32 %v1556_v55, %v877_v50 }
 0x138   : > { %1597 = vst [vmem:[%s2478_s12 + $0x30] sm:$0xff] %v1589_v53  ;;  %v1590_v44 = vadd.f32 %v2034_v54, %v1887_v37 }
 0x139   : > { %1595 = vst [vmem:[%s2478_s12 + $0x20] sm:$0xff] %v1587_v56  ;;  %v1588_v36 = vadd.f32 %v2035_v19, %v1887_v37 }
 0x13a   : > { %1598 = vst [vmem:[%s2478_s12 + $0x38] sm:$0xff] %v1590_v44 }
 0x13b   : > { %1596 = vst [vmem:[%s2478_s12 + $0x28] sm:$0xff] %v1588_v36 }
 0x13c PF: > { %s13_s16 = sadd.s32 1, %s2204_s16   ;;  %s2509_s12 = smov %s2196_s14 }
 0x13d   : > { %p10_p7 = scmp.ge.s32.totalorder %s13_s16, 6   ;;  %s2510_s13 = smov %s2200_s15 }
 0x13e   : > { %s2511_s14 = smov %s2514_s17  ;;  %s2512_s15 = smov %s2518_s18 }
 0x13f   :  { %12 = sbr.rel (!%p10_p7) target bundleno = 3 (0x3), region = 76 }

</bundles_post_ra>
